<compile_context>
chip_gen: v5e
topology: v5e:2x2
jax: 0.10.0
libtpu: 0.0.40
codegen_flags: <defaults>
</compile_context>

<pallas_src>
import functools
import math

import jax
import jax.numpy as jnp
from jax import lax
from jax.experimental import pallas as pl
from jax.experimental.pallas import tpu as pltpu


_MXU_IN_DTYPE = jnp.float32  # set to jnp.bfloat16 on v6e/v7x for higher MXU throughput


# -----------------------------------------------------------------------------
# Small helpers
# -----------------------------------------------------------------------------
def _col_tile(n):
    """Column (lane) tile for the CN-layout matmul kernels."""
    if n <= 1024:
        return n
    for t in (1024, 512, 256, 128):
        if n % t == 0:
            return t
    return n


def _row_tile(n):
    """T_y tile for the neg_cent kernel (keeps the working set bounded on v7x)."""
    if n <= 1024:
        return n
    for t in (512, 256, 128):
        if n % t == 0:
            return t
    return n


def _cp(*sems):
    return pltpu.CompilerParams(dimension_semantics=sems)


def _apply_act(y, act):
    if act == "relu":
        return jnp.maximum(y, 0.0)
    if act == "tanh":
        return jnp.tanh(y)
    return y


# -----------------------------------------------------------------------------
# Pallas kernels
# -----------------------------------------------------------------------------
def _dense_kernel(x_ref, w_ref, b_ref, o_ref, *, act):
    # x: (Cin, tn), w: (Cout, Cin), b: (Cout, 1) -> o: (Cout, tn)
    y = (
        jnp.dot(
            w_ref[...].astype(_MXU_IN_DTYPE),
            x_ref[...].astype(_MXU_IN_DTYPE),
            preferred_element_type=jnp.float32,
        )
        + b_ref[...]
    )
    o_ref[...] = _apply_act(y, act).astype(o_ref.dtype)


def _dense_mask_kernel(x_ref, m_ref, w_ref, b_ref, o_ref, *, act, mask_in, mask_out):
    x = x_ref[...]
    m = m_ref[...]
    if mask_in:
        x = x * m
    y = (
        jnp.dot(
            w_ref[...].astype(_MXU_IN_DTYPE),
            x.astype(_MXU_IN_DTYPE),
            preferred_element_type=jnp.float32,
        )
        + b_ref[...]
    )
    y = _apply_act(y, act)
    if mask_out:
        y = y * m
    o_ref[...] = y.astype(o_ref.dtype)


def _matmul_res_ln_kernel(
    x_ref, h_ref, m_ref, w_ref, b_ref, g_ref, be_ref, o_ref, *, mask_in, eps
):
    # y = LayerNorm_channels(x + W @ (h [* mask]) + b) * gamma + beta
    h = h_ref[...]
    if mask_in:
        h = h * m_ref[...]
    y = (
        x_ref[...]
        + jnp.dot(
            w_ref[...].astype(_MXU_IN_DTYPE),
            h.astype(_MXU_IN_DTYPE),
            preferred_element_type=jnp.float32,
        )
        + b_ref[...]
    )
    mu = jnp.mean(y, axis=0, keepdims=True)
    var = jnp.mean(jnp.square(y - mu), axis=0, keepdims=True)
    o_ref[...] = ((y - mu) * lax.rsqrt(var + eps) * g_ref[...] + be_ref[...]).astype(
        o_ref.dtype
    )


def _embed_fuse_kernel(bert_ref, ja_ref, emb_ref, wb_ref, bb_ref, wj_ref, bj_ref,
                       o_ref, *, scale):
    # (bert_proj + ja_bert_proj + (emb+tone+lang)) * sqrt(H), all fused.
    y = (
        jnp.dot(
            wb_ref[...].astype(_MXU_IN_DTYPE),
            bert_ref[...].astype(_MXU_IN_DTYPE),
            preferred_element_type=jnp.float32,
        )
        + bb_ref[...]
        + jnp.dot(
            wj_ref[...].astype(_MXU_IN_DTYPE),
            ja_ref[...].astype(_MXU_IN_DTYPE),
            preferred_element_type=jnp.float32,
        )
        + bj_ref[...]
        + emb_ref[...]
    ) * scale
    o_ref[...] = y.astype(o_ref.dtype)


def _attn_kernel(qkv_ref, m_ref, o_ref, *, scale):
    # qkv: (3, T, dh) for one (batch, head); m: (1, T) key mask; o: (T, dh)
    q = qkv_ref[0]
    k = qkv_ref[1]
    v = qkv_ref[2]
    s = (
        lax.dot_general(q, k, (((1,), (1,)), ((), ())),
                        preferred_element_type=jnp.float32)
        * scale
    )                                                    # (Tq, Tk)
    s = jnp.where(m_ref[...] > 0.0, s, jnp.float32(-1e4))
    s = s - jnp.max(s, axis=-1, keepdims=True)
    e = jnp.exp(s)
    p = e * pl.reciprocal(jnp.sum(e, axis=-1, keepdims=True), approx=True)
    o_ref[...] = jnp.dot(p, v, preferred_element_type=jnp.float32).astype(o_ref.dtype)


def _neg_cent_kernel(zp_ref, stats_ref, o_ref, *, half):
    # zp: (C, tty), stats: (2C, Tx) = [m_p ; logs_p] -> o: (tty, Tx)
    zp = zp_ref[...]
    stats = stats_ref[...]
    mp = stats[:half]
    logsp = stats[half:]
    s_p_sq_r = jnp.exp(-2.0 * logsp)
    nc1 = jnp.sum(-0.5 * math.log(2.0 * math.pi) - logsp, axis=0, keepdims=True)
    nc4 = jnp.sum(-0.5 * (mp * mp) * s_p_sq_r, axis=0, keepdims=True)
    nc2 = lax.dot_general(
        -0.5 * (zp * zp), s_p_sq_r, (((0,), (0,)), ((), ())),
        preferred_element_type=jnp.float32,
    )
    nc3 = lax.dot_general(
        zp, mp * s_p_sq_r, (((0,), (0,)), ((), ())),
        preferred_element_type=jnp.float32,
    )
    o_ref[...] = (nc1 + nc2 + nc3 + nc4).astype(o_ref.dtype)


def _expand_kernel(stats_ref, attn_ref, o_ref):
    # stats: (2I, Tx), attn: (Ty, Tx) -> o: (2I, Ty)  (contract Tx)
    o_ref[...] = lax.dot_general(
        stats_ref[...], attn_ref[...], (((1,), (1,)), ((), ())),
        preferred_element_type=jnp.float32,
    ).astype(o_ref.dtype)


# -----------------------------------------------------------------------------
# Pallas wrappers
# -----------------------------------------------------------------------------
def dense_cn(x, w, b, *, mask=None, act=None, mask_in=False, mask_out=False):
    """Fused 1x1 conv in CN layout: act(W @ (x [*mask]) + b) [*mask].

    x: (Cin, N) with N = B*T packed in the lane axis, w: (Cout, Cin), b: (Cout,).
    """
    cin, n = x.shape
    cout = w.shape[0]
    tn = _col_tile(n)
    grid = (n // tn,)
    b2 = b.reshape(cout, 1)
    if mask is None:
        kernel = functools.partial(_dense_kernel, act=act)
        in_specs = [
            pl.BlockSpec((cin, tn), lambda j: (0, j)),
            pl.BlockSpec((cout, cin), lambda j: (0, 0)),
            pl.BlockSpec((cout, 1), lambda j: (0, 0)),
        ]
        args = (x, w, b2)
    else:
        kernel = functools.partial(
            _dense_mask_kernel, act=act, mask_in=mask_in, mask_out=mask_out
        )
        in_specs = [
            pl.BlockSpec((cin, tn), lambda j: (0, j)),
            pl.BlockSpec((1, tn), lambda j: (0, j)),
            pl.BlockSpec((cout, cin), lambda j: (0, 0)),
            pl.BlockSpec((cout, 1), lambda j: (0, 0)),
        ]
        args = (x, mask, w, b2)
    return pl.pallas_call(
        kernel,
        out_shape=jax.ShapeDtypeStruct((cout, n), x.dtype),
        grid=grid,
        in_specs=in_specs,
        out_specs=pl.BlockSpec((cout, tn), lambda j: (0, j)),
        compiler_params=_cp("parallel"),
    )(*args)


def matmul_res_ln(x, h, w, b, gamma, beta, *, mask, mask_in, eps=1e-5):
    """LayerNorm_channels(x + W @ (h [*mask]) + b) in CN layout."""
    H, n = x.shape
    hh = h.shape[0]
    tn = _col_tile(n)
    return pl.pallas_call(
        functools.partial(_matmul_res_ln_kernel, mask_in=mask_in, eps=eps),
        out_shape=jax.ShapeDtypeStruct((H, n), x.dtype),
        grid=(n // tn,),
        in_specs=[
            pl.BlockSpec((H, tn), lambda j: (0, j)),
            pl.BlockSpec((hh, tn), lambda j: (0, j)),
            pl.BlockSpec((1, tn), lambda j: (0, j)),
            pl.BlockSpec((H, hh), lambda j: (0, 0)),
            pl.BlockSpec((H, 1), lambda j: (0, 0)),
            pl.BlockSpec((H, 1), lambda j: (0, 0)),
            pl.BlockSpec((H, 1), lambda j: (0, 0)),
        ],
        out_specs=pl.BlockSpec((H, tn), lambda j: (0, j)),
        compiler_params=_cp("parallel"),
    )(x, h, mask, w, b.reshape(-1, 1), gamma.reshape(-1, 1), beta.reshape(-1, 1))


def embed_fuse(bert_cn, ja_cn, emb_cn, wb, bb, wj, bj, scale):
    cb, n = bert_cn.shape
    cj = ja_cn.shape[0]
    H = wb.shape[0]
    tn = _col_tile(n)
    return pl.pallas_call(
        functools.partial(_embed_fuse_kernel, scale=scale),
        out_shape=jax.ShapeDtypeStruct((H, n), emb_cn.dtype),
        grid=(n // tn,),
        in_specs=[
            pl.BlockSpec((cb, tn), lambda j: (0, j)),
            pl.BlockSpec((cj, tn), lambda j: (0, j)),
            pl.BlockSpec((H, tn), lambda j: (0, j)),
            pl.BlockSpec((H, cb), lambda j: (0, 0)),
            pl.BlockSpec((H, 1), lambda j: (0, 0)),
            pl.BlockSpec((H, cj), lambda j: (0, 0)),
            pl.BlockSpec((H, 1), lambda j: (0, 0)),
        ],
        out_specs=pl.BlockSpec((H, tn), lambda j: (0, j)),
        compiler_params=_cp("parallel"),
    )(bert_cn, ja_cn, emb_cn, wb, bb.reshape(-1, 1), wj, bj.reshape(-1, 1))


def fused_attention(qkv_t, key_mask, dh):
    """Fused scores/mask/softmax/context.

    qkv_t: (B, nh, 3, T, dh), key_mask: (B, 1, T) -> (B, nh, T, dh)
    """
    B, nh, _, T, _ = qkv_t.shape
    scale = 1.0 / math.sqrt(dh)
    return pl.pallas_call(
        functools.partial(_attn_kernel, scale=scale),
        out_shape=jax.ShapeDtypeStruct((B, nh, T, dh), qkv_t.dtype),
        grid=(B, nh),
        in_specs=[
            pl.BlockSpec((None, None, 3, T, dh), lambda b, h: (b, h, 0, 0, 0)),
            pl.BlockSpec((None, 1, T), lambda b, h: (b, 0, 0)),
        ],
        out_specs=pl.BlockSpec((None, None, T, dh), lambda b, h: (b, h, 0, 0)),
        compiler_params=_cp("parallel", "parallel"),
    )(qkv_t, key_mask)


def neg_cent_pallas(z_p, stats_p):
    """Fused MAS negative-centroid.  z_p: (B, C, Ty), stats_p: (B, 2C, Tx)."""
    B, C, Ty = z_p.shape
    Tx = stats_p.shape[2]
    tty = _row_tile(Ty)
    return pl.pallas_call(
        functools.partial(_neg_cent_kernel, half=C),
        out_shape=jax.ShapeDtypeStruct((B, Ty, Tx), jnp.float32),
        grid=(B, Ty // tty),
        in_specs=[
            pl.BlockSpec((None, C, tty), lambda b, t: (b, 0, t)),
            pl.BlockSpec((None, 2 * C, Tx), lambda b, t: (b, 0, 0)),
        ],
        out_specs=pl.BlockSpec((None, tty, Tx), lambda b, t: (b, t, 0)),
        compiler_params=_cp("parallel", "parallel"),
    )(z_p, stats_p)


def expand_prior_pallas(stats_p, attn):
    """Expand [m_p ; logs_p] with the alignment in one matmul per batch."""
    B, c2, Tx = stats_p.shape
    Ty = attn.shape[1]
    return pl.pallas_call(
        _expand_kernel,
        out_shape=jax.ShapeDtypeStruct((B, c2, Ty), stats_p.dtype),
        grid=(B,),
        in_specs=[
            pl.BlockSpec((None, c2, Tx), lambda b: (b, 0, 0)),
            pl.BlockSpec((None, Ty, Tx), lambda b: (b, 0, 0)),
        ],
        out_specs=pl.BlockSpec((None, c2, Ty), lambda b: (b, 0, 0)),
        compiler_params=_cp("parallel"),
    )(stats_p, attn)


# -----------------------------------------------------------------------------
# Plain-JAX helpers (glue)
# -----------------------------------------------------------------------------
def sequence_mask(lengths, max_length):
    return (jnp.arange(max_length)[None, :] < lengths[:, None]).astype(jnp.float32)


def maximum_path_jax(neg_cent, mask):
    """Monotonic alignment search (Viterbi DP), matching maximum_path_jit."""
    B, T_y, T_x = neg_cent.shape
    t_ys = jnp.sum(mask, axis=1)[:, 0].astype(jnp.int32)
    t_xs = jnp.sum(mask, axis=2)[:, 0].astype(jnp.int32)
    max_neg = jnp.float32(-1e9)
    xs = jnp.arange(T_x, dtype=jnp.int32)

    def single(value, t_y, t_x):
        def fwd_step(prev_row, inp):
            y, row = inp
            lower = jnp.maximum(0, t_x + y - t_y)
            upper = jnp.minimum(t_x, y + 1)
            band = (xs >= lower) & (xs < upper)
            v_cur = jnp.where(xs == y, max_neg, prev_row)
            special = jnp.where(y == 0, jnp.float32(0.0), max_neg)
            v_prev = jnp.concatenate([special.reshape(1), prev_row[:-1]])
            new_row = jnp.where(band, row + jnp.maximum(v_prev, v_cur), row)
            return new_row, new_row

        _, val = lax.scan(
            fwd_step,
            jnp.zeros((T_x,), value.dtype),
            (jnp.arange(T_y, dtype=jnp.int32), value),
        )

        def back_step(index, y):
            active = y < t_y
            path_row = jnp.where(
                active,
                jax.nn.one_hot(index, T_x, dtype=value.dtype),
                jnp.zeros((T_x,), value.dtype),
            )
            ym1 = jnp.maximum(y - 1, 0)
            vim = val[ym1, index]
            vim1 = val[ym1, jnp.maximum(index - 1, 0)]
            dec = (index != 0) & ((index == y) | (vim < vim1)) & (y > 0)
            new_index = jnp.where(active & dec, index - 1, index)
            return new_index, path_row

        _, path_rows = lax.scan(
            back_step, t_x - 1, jnp.arange(T_y - 1, -1, -1, dtype=jnp.int32)
        )
        return path_rows[::-1]

    return jax.vmap(single)(neg_cent.astype(jnp.float32), t_ys, t_xs)


def rand_slice_segments(x, lengths, segment_size, key):
    B, C, _ = x.shape
    ids_str_max = jnp.maximum(lengths - segment_size + 1, 1)
    r = jax.random.uniform(key, (B,))
    ids_str = (r * ids_str_max).astype(jnp.int32)

    def slice_one(xb, s):
        return lax.dynamic_slice(xb, (0, s), (C, segment_size))

    return jax.vmap(slice_one)(x, ids_str), ids_str


def _broadcast_cond(w, b, g, B, T):
    """(Cout, G) @ g.T broadcast over time -> (Cout, B*T) (tiny, left to XLA)."""
    cond = w @ g.T + b[:, None]                       # (Cout, B)
    return jnp.broadcast_to(cond[:, :, None], (w.shape[0], B, T)).reshape(
        w.shape[0], B * T
    )


# -----------------------------------------------------------------------------
# Sub-modules (CN layout: (C, B*T))
# -----------------------------------------------------------------------------
def encoder_forward(x, mask_cn, mask_b1t, g, p, B, T):
    # TODO(synk): attentions.Encoder source was not provided; this is a standard
    # VITS-style MHA + FFN stack (relative position bias, kernel-size>1 FFN
    # convs and dropout omitted).
    H, N = x.shape
    nh = p["n_heads"]
    dh = H // nh

    cond = _broadcast_cond(p["spk_w"], p["spk_b"], g, B, T)
    x = (x + cond) * mask_cn

    for lp in p["layers"]:
        # Fused Q/K/V projection (single (3H, H) matmul, input-masked).
        qkv = dense_cn(x, lp["w_qkv"], lp["b_qkv"], mask=mask_cn, mask_in=True)
        # Layout plumbing only (one transpose in, one out, per layer).
        qkv_t = qkv.reshape(3, nh, dh, B, T).transpose(3, 1, 0, 4, 2)  # (B,nh,3,T,dh)
        ctx_t = fused_attention(qkv_t, mask_b1t, dh)                    # (B,nh,T,dh)
        ctx = ctx_t.transpose(1, 3, 0, 2).reshape(H, N)                 # (H, B*T)
        # Output proj + residual + channel LayerNorm fused.
        x = matmul_res_ln(x, ctx, lp["wo"], lp["bo"], lp["ln1_g"], lp["ln1_b"],
                          mask=mask_cn, mask_in=False)
        # FFN conv1 (+relu, input-masked) then conv2 + residual + LayerNorm fused.
        h1 = dense_cn(x, lp["w1"], lp["b1"], mask=mask_cn, mask_in=True, act="relu")
        x = matmul_res_ln(x, h1, lp["w2"], lp["b2"], lp["ln2_g"], lp["ln2_b"],
                          mask=mask_cn, mask_in=True)
    return x * mask_cn


def enc_p_forward(x_ids, x_lengths, tone, language, bert, ja_bert, g, p):
    H = p["hidden_channels"]
    B, Tx = x_ids.shape
    N = B * Tx

    emb3 = p["emb"][x_ids] + p["tone_emb"][tone] + p["lang_emb"][language]  # (B,Tx,H)
    emb3_cn = emb3.transpose(2, 0, 1).reshape(H, N)
    bert_cn = bert.transpose(1, 0, 2).reshape(bert.shape[1], N)
    ja_cn = ja_bert.transpose(1, 0, 2).reshape(ja_bert.shape[1], N)

    x_cn = embed_fuse(bert_cn, ja_cn, emb3_cn, p["bert_w"], p["bert_b"],
                      p["ja_bert_w"], p["ja_bert_b"], math.sqrt(H))         # (H, N)

    mask_bt = sequence_mask(x_lengths, Tx).astype(x_cn.dtype)               # (B, Tx)
    mask_cn = mask_bt.reshape(1, N)
    mask_b1t = mask_bt[:, None, :]                                          # (B,1,Tx)

    x_enc = encoder_forward(x_cn * mask_cn, mask_cn, mask_b1t, g,
                            p["encoder"], B, Tx)                            # (H, N)
    stats = dense_cn(x_enc, p["proj_w"], p["proj_b"],
                     mask=mask_cn, mask_out=True)                           # (2I, N)
    return x_enc, stats, mask_cn, mask_b1t


def enc_q_forward(y, y_lengths, g, p, key):
    B, spec, Ty = y.shape
    N = B * Ty
    H = p["pre_w"].shape[0]

    y_cn = y.transpose(1, 0, 2).reshape(spec, N)
    mask_bt = sequence_mask(y_lengths, Ty).astype(y.dtype)
    mask_cn = mask_bt.reshape(1, N)

    h = dense_cn(y_cn, p["pre_w"], p["pre_b"], mask=mask_cn, mask_out=True)
    # TODO(synk): PosteriorEncoder's WaveNet (WN) dilated-conv stack source not
    # provided; replaced by pointwise speaker conditioning only.
    h = (h + _broadcast_cond(p["cond_w"], p["cond_b"], g, B, Ty)) * mask_cn
    stats_cn = dense_cn(h, p["proj_w"], p["proj_b"], mask=mask_cn, mask_out=True)

    c2 = stats_cn.shape[0]
    stats_bct = stats_cn.reshape(c2, B, Ty).transpose(1, 0, 2)              # (B,2I,Ty)
    m_q, logs_q = jnp.split(stats_bct, 2, axis=1)
    y_mask = mask_bt[:, None, :]                                            # (B,1,Ty)
    noise = jax.random.normal(key, m_q.shape, m_q.dtype)
    z = (m_q + noise * jnp.exp(logs_q)) * y_mask
    return z, m_q, logs_q, y_mask


def flow_forward(z, y_mask, g):
    # TODO(synk): TransformerCouplingBlock source not provided; identity flow.
    del g
    return z * y_mask


def duration_predictor_forward(x_cn, mask_cn, g, p, B, Tx):
    # TODO(synk): DurationPredictor source not provided; simplified pointwise
    # conv stack (conv -> relu -> proj), speaker-conditioned.
    H = x_cn.shape[0]
    xd = x_cn + _broadcast_cond(p["cond_w"], p["cond_b"], g, B, Tx)
    h = dense_cn(xd, p["w1"], p["b1"], mask=mask_cn, mask_in=True, act="relu")
    logw = dense_cn(h, p["w2"], p["b2"], mask=mask_cn, mask_in=True, mask_out=True)
    return logw.reshape(1, B, Tx).transpose(1, 0, 2)                        # (B,1,Tx)


def sdp_forward(x, x_mask, w, g):
    # TODO(synk): StochasticDurationPredictor (normalizing-flow NLL) source not
    # provided; returning zero per-batch loss placeholder.
    del x, x_mask, w, g
    return jnp.zeros((1,), jnp.float32)


def decoder_forward(z_slice, g, p):
    # TODO(synk): AudioGenerator (HiFi-GAN upsampling stack) source not
    # provided; stand-in pointwise projection to 1 channel (no upsampling).
    B, I, S = z_slice.shape
    z_cn = z_slice.transpose(1, 0, 2).reshape(I, B * S)
    z_cn = z_cn + _broadcast_cond(p["cond_w"], p["cond_b"], g, B, S)
    o_cn = dense_cn(z_cn, p["out_w"], p["out_b"], act="tanh")               # (1, B*S)
    return o_cn.reshape(1, B, S).transpose(1, 0, 2)                         # (B,1,S)


# -----------------------------------------------------------------------------
# Full model forward
# -----------------------------------------------------------------------------
def openvoice_sovits_forward(params, x, x_lengths, y, y_lengths, sid, tone,
                             language, bert, ja_bert, rng):
    k_enc_q, k_slice = jax.random.split(rng)
    B, Tx = x.shape
    H = params["enc_p"]["hidden_channels"]
    I = params["inter_channels"]

    g = params["emb_g"][sid]                                                # (B, G)
    g_p = g                                                                 # use_vc=False

    x_cn, stats_p_cn, xmask_cn, x_mask = enc_p_forward(
        x, x_lengths, tone, language, bert, ja_bert, g_p, params["enc_p"]
    )
    # Boundary layout conversions (also needed for the returned tensors).
    x_bct = x_cn.reshape(H, B, Tx).transpose(1, 0, 2)                       # (B,H,Tx)
    stats_p = stats_p_cn.reshape(2 * I, B, Tx).transpose(1, 0, 2)           # (B,2I,Tx)

    z, m_q, logs_q, y_mask = enc_q_forward(y, y_lengths, g, params["enc_q"], k_enc_q)
    z_p = flow_forward(z, y_mask, g)

    # --- monotonic alignment search (no-grad block in torch) -----------------
    neg_cent = neg_cent_pallas(z_p, stats_p)                                # (B,Ty,Tx)
    attn_mask = x_mask[:, :, None, :] * y_mask[:, :, :, None]               # (B,1,Ty,Tx)
    attn = maximum_path_jax(neg_cent, attn_mask[:, 0])[:, None]             # (B,1,Ty,Tx)
    attn = lax.stop_gradient(attn)

    w = jnp.sum(attn, axis=2)                                               # (B,1,Tx)
    mask_sum = jnp.sum(x_mask)
    l_length_sdp = sdp_forward(x_bct, x_mask, w, g) / mask_sum
    logw_ = jnp.log(w + 1e-6) * x_mask
    logw = duration_predictor_forward(x_cn, xmask_cn, g, params["dp"], B, Tx)
    l_length_dp = jnp.sum((logw - logw_) ** 2, axis=(1, 2)) / mask_sum
    l_length = l_length_dp + l_length_sdp

    # Fused expansion of [m_p ; logs_p] with the alignment (single matmul/batch).
    stats_exp = expand_prior_pallas(stats_p, attn[:, 0])                    # (B,2I,Ty)
    m_p_exp, logs_p_exp = jnp.split(stats_exp, 2, axis=1)

    z_slice, ids_slice = rand_slice_segments(
        z, y_lengths, params["segment_size"], k_slice
    )
    o = decoder_forward(z_slice, g, params["dec"])

    return (
        o,
        l_length,
        attn,
        ids_slice,
        x_mask,
        y_mask,
        (z, z_p, m_p_exp, logs_p_exp, m_q, logs_q),
        (x_bct, logw, logw_),
    )


# -----------------------------------------------------------------------------
# Deterministic parameter construction
# -----------------------------------------------------------------------------
def make_params(key, *, n_vocab, spec_channels, segment_size, inter_channels,
                hidden_channels, filter_channels, n_heads, n_layers,
                gin_channels, n_speakers, num_languages, num_tones):
    def nrm(k, shape, std=0.02):
        return std * jax.random.normal(k, shape, jnp.float32)

    keys = iter(jax.random.split(key, 256))
    H, G, I, F = hidden_channels, gin_channels, inter_channels, filter_channels

    enc_layers = []
    for _ in range(n_layers):
        enc_layers.append(dict(
            w_qkv=nrm(next(keys), (3 * H, H)), b_qkv=jnp.zeros((3 * H,)),
            wo=nrm(next(keys), (H, H)), bo=jnp.zeros((H,)),
            w1=nrm(next(keys), (F, H)), b1=jnp.zeros((F,)),
            w2=nrm(next(keys), (H, F)), b2=jnp.zeros((H,)),
            ln1_g=jnp.ones((H,)), ln1_b=jnp.zeros((H,)),
            ln2_g=jnp.ones((H,)), ln2_b=jnp.zeros((H,)),
        ))

    params = dict(
        segment_size=segment_size,
        inter_channels=I,
        emb_g=nrm(next(keys), (n_speakers, G), 0.1),
        enc_p=dict(
            hidden_channels=H,
            emb=nrm(next(keys), (n_vocab, H), H ** -0.5),
            tone_emb=nrm(next(keys), (num_tones, H), H ** -0.5),
            lang_emb=nrm(next(keys), (num_languages, H), H ** -0.5),
            bert_w=nrm(next(keys), (H, 1024)), bert_b=jnp.zeros((H,)),
            ja_bert_w=nrm(next(keys), (H, 768)), ja_bert_b=jnp.zeros((H,)),
            proj_w=nrm(next(keys), (2 * I, H)), proj_b=jnp.zeros((2 * I,)),
            encoder=dict(
                n_heads=n_heads,
                spk_w=nrm(next(keys), (H, G)), spk_b=jnp.zeros((H,)),
                layers=enc_layers,
            ),
        ),
        enc_q=dict(
            pre_w=nrm(next(keys), (H, spec_channels)), pre_b=jnp.zeros((H,)),
            cond_w=nrm(next(keys), (H, G)), cond_b=jnp.zeros((H,)),
            proj_w=nrm(next(keys), (2 * I, H)), proj_b=jnp.zeros((2 * I,)),
        ),
        dp=dict(
            cond_w=nrm(next(keys), (H, G)), cond_b=jnp.zeros((H,)),
            w1=nrm(next(keys), (256, H)), b1=jnp.zeros((256,)),
            w2=nrm(next(keys), (1, 256)), b2=jnp.zeros((1,)),
        ),
        dec=dict(
            cond_w=nrm(next(keys), (I, G)), cond_b=jnp.zeros((I,)),
            out_w=nrm(next(keys), (1, I)), out_b=jnp.zeros((1,)),
        ),
    )
    return params


# -----------------------------------------------------------------------------
# Main
# -----------------------------------------------------------------------------
if __name__ == "__main__":
    B, T_x, T_y = 2, 8, 16
    cfg = dict(
        n_vocab=50, spec_channels=20, segment_size=4, inter_channels=16,
        hidden_channels=32, filter_channels=64, n_heads=2, n_layers=2,
        gin_channels=16, n_speakers=4, num_languages=3, num_tones=4,
    )

    root = jax.random.PRNGKey(0)
    k_param, k_x, k_tone, k_lang, k_bert, k_jabert, k_y, k_sid, k_fwd = (
        jax.random.split(root, 9)
    )

    params = make_params(k_param, **cfg)

    x = jax.random.randint(k_x, (B, T_x), 0, cfg["n_vocab"], jnp.int32)
    x_lengths = jnp.array([T_x, 6], jnp.int32)
    tone = jax.random.randint(k_tone, (B, T_x), 0, cfg["num_tones"], jnp.int32)
    language = jax.random.randint(k_lang, (B, T_x), 0, cfg["num_languages"], jnp.int32)
    bert = jax.random.normal(k_bert, (B, 1024, T_x), jnp.float32)
    ja_bert = jax.random.normal(k_jabert, (B, 768, T_x), jnp.float32)
    y = jax.random.normal(k_y, (B, cfg["spec_channels"], T_y), jnp.float32)
    y_lengths = jnp.array([T_y, 12], jnp.int32)
    sid = jax.random.randint(k_sid, (B,), 0, cfg["n_speakers"], jnp.int32)

    out = openvoice_sovits_forward(
        params, x, x_lengths, y, y_lengths, sid, tone, language, bert, ja_bert,
        k_fwd,
    )
    jax.block_until_ready(out)
    print("KERNEL_OK")
</pallas_src>

<mosaic_0001>
module attributes {stable_mosaic.version = 11 : i64} {
  func.func @_embed_fuse_kernel(%arg0: i32, %arg1: memref<1024x16xf32, #tpu.memory_space<vmem>>, %arg2: memref<768x16xf32, #tpu.memory_space<vmem>>, %arg3: memref<32x16xf32, #tpu.memory_space<vmem>>, %arg4: memref<32x1024xf32, #tpu.memory_space<vmem>>, %arg5: memref<32x1xf32, #tpu.memory_space<vmem>>, %arg6: memref<32x768xf32, #tpu.memory_space<vmem>>, %arg7: memref<32x1xf32, #tpu.memory_space<vmem>>, %arg8: memref<32x16xf32, #tpu.memory_space<vmem>>) attributes {dimension_semantics = [#tpu.dimension_semantics<parallel>], iteration_bounds = array<i64: 1>, scalar_prefetch = 0 : i64, scratch_operands = 0 : i64, tpu.core_type = #tpu.core_type<tc>, window_params = [{transform_indices = @transform_0, window_bounds = array<i64: 1024, 16>}, {transform_indices = @transform_1, window_bounds = array<i64: 768, 16>}, {transform_indices = @transform_2, window_bounds = array<i64: 32, 16>}, {pipeline_mode = #tpu.pipeline_mode<synchronous>, transform_indices = @transform_3, window_bounds = array<i64: 32, 1024>}, {pipeline_mode = #tpu.pipeline_mode<synchronous>, transform_indices = @transform_4, window_bounds = array<i64: 32, 1>}, {pipeline_mode = #tpu.pipeline_mode<synchronous>, transform_indices = @transform_5, window_bounds = array<i64: 32, 768>}, {pipeline_mode = #tpu.pipeline_mode<synchronous>, transform_indices = @transform_6, window_bounds = array<i64: 32, 1>}, {transform_indices = @transform_7, window_bounds = array<i64: 32, 16>}]} {
    %c0 = arith.constant 0 : index
    %c0_0 = arith.constant 0 : index
    %0 = vector.load %arg4[%c0, %c0_0] : memref<32x1024xf32, #tpu.memory_space<vmem>>, vector<32x1024xf32>
    %c0_1 = arith.constant 0 : index
    %c0_2 = arith.constant 0 : index
    %1 = vector.load %arg1[%c0_1, %c0_2] : memref<1024x16xf32, #tpu.memory_space<vmem>>, vector<1024x16xf32>
    %cst = arith.constant dense<0.000000e+00> : vector<32x16xf32>
    %2 = tpu.matmul %0, %1, %cst {dimension_numbers = #tpu.dot_dimension_numbers<[1], [0], [0], [1], [0, 0, 1, 1], [], []>} : vector<32x1024xf32>, vector<1024x16xf32>, vector<32x16xf32> -> vector<32x16xf32>
    %c0_3 = arith.constant 0 : index
    %c0_4 = arith.constant 0 : index
    %3 = vector.load %arg5[%c0_3, %c0_4] : memref<32x1xf32, #tpu.memory_space<vmem>>, vector<32x1xf32>
    %4 = vector.broadcast %3 : vector<32x1xf32> to vector<32x16xf32>
    %5 = arith.addf %2, %4 : vector<32x16xf32>
    %c0_5 = arith.constant 0 : index
    %c0_6 = arith.constant 0 : index
    %6 = vector.load %arg6[%c0_5, %c0_6] : memref<32x768xf32, #tpu.memory_space<vmem>>, vector<32x768xf32>
    %c0_7 = arith.constant 0 : index
    %c0_8 = arith.constant 0 : index
    %7 = vector.load %arg2[%c0_7, %c0_8] : memref<768x16xf32, #tpu.memory_space<vmem>>, vector<768x16xf32>
    %cst_9 = arith.constant dense<0.000000e+00> : vector<32x16xf32>
    %8 = tpu.matmul %6, %7, %cst_9 {dimension_numbers = #tpu.dot_dimension_numbers<[1], [0], [0], [1], [0, 0, 1, 1], [], []>} : vector<32x768xf32>, vector<768x16xf32>, vector<32x16xf32> -> vector<32x16xf32>
    %9 = arith.addf %5, %8 : vector<32x16xf32>
    %c0_10 = arith.constant 0 : index
    %c0_11 = arith.constant 0 : index
    %10 = vector.load %arg7[%c0_10, %c0_11] : memref<32x1xf32, #tpu.memory_space<vmem>>, vector<32x1xf32>
    %11 = vector.broadcast %10 : vector<32x1xf32> to vector<32x16xf32>
    %12 = arith.addf %9, %11 : vector<32x16xf32>
    %c0_12 = arith.constant 0 : index
    %c0_13 = arith.constant 0 : index
    %13 = vector.load %arg3[%c0_12, %c0_13] : memref<32x16xf32, #tpu.memory_space<vmem>>, vector<32x16xf32>
    %14 = arith.addf %12, %13 : vector<32x16xf32>
    %cst_14 = arith.constant 5.65685415 : f32
    %15 = vector.broadcast %cst_14 : f32 to vector<32x16xf32>
    %16 = arith.mulf %14, %15 : vector<32x16xf32>
    %c0_15 = arith.constant 0 : index
    %c0_16 = arith.constant 0 : index
    %17 = vector.load %arg8[%c0_15, %c0_16] : memref<32x16xf32, #tpu.memory_space<vmem>>, vector<32x16xf32>
    tpu.vector_store %arg8[%c0_15, %c0_16], %16 {strides = array<i32>} : memref<32x16xf32, #tpu.memory_space<vmem>>, vector<32x16xf32>,
    return
  }
  func.func @transform_0(%arg0: i32) -> (i32, i32) {
    %c0_i32 = arith.constant 0 : i32
    %c0_i32_0 = arith.constant 0 : i32
    return %c0_i32, %arg0 : i32, i32
  }
  func.func @transform_1(%arg0: i32) -> (i32, i32) {
    %c0_i32 = arith.constant 0 : i32
    %c0_i32_0 = arith.constant 0 : i32
    return %c0_i32, %arg0 : i32, i32
  }
  func.func @transform_2(%arg0: i32) -> (i32, i32) {
    %c0_i32 = arith.constant 0 : i32
    %c0_i32_0 = arith.constant 0 : i32
    return %c0_i32, %arg0 : i32, i32
  }
  func.func @transform_3(%arg0: i32) -> (i32, i32) {
    %c0_i32 = arith.constant 0 : i32
    %c0_i32_0 = arith.constant 0 : i32
    %c0_i32_1 = arith.constant 0 : i32
    return %c0_i32, %c0_i32_0 : i32, i32
  }
  func.func @transform_4(%arg0: i32) -> (i32, i32) {
    %c0_i32 = arith.constant 0 : i32
    %c0_i32_0 = arith.constant 0 : i32
    %c0_i32_1 = arith.constant 0 : i32
    return %c0_i32, %c0_i32_0 : i32, i32
  }
  func.func @transform_5(%arg0: i32) -> (i32, i32) {
    %c0_i32 = arith.constant 0 : i32
    %c0_i32_0 = arith.constant 0 : i32
    %c0_i32_1 = arith.constant 0 : i32
    return %c0_i32, %c0_i32_0 : i32, i32
  }
  func.func @transform_6(%arg0: i32) -> (i32, i32) {
    %c0_i32 = arith.constant 0 : i32
    %c0_i32_0 = arith.constant 0 : i32
    %c0_i32_1 = arith.constant 0 : i32
    return %c0_i32, %c0_i32_0 : i32, i32
  }
  func.func @transform_7(%arg0: i32) -> (i32, i32) {
    %c0_i32 = arith.constant 0 : i32
    %c0_i32_0 = arith.constant 0 : i32
    return %c0_i32, %arg0 : i32, i32
  }
}

</mosaic_0001>

<bundles_post_ra>
// kernel: tpu_custom_call.1
= control target key start
LH: loop header
LB: loop body
LE: loop exit
PB: predicated region body
PF: predicated region fallthrough
CT: control target
= control target key end

     0   :  { %vm780_vm0 = vcmask 130048   ;;  %s1770_s0 = inlined_call_operand.vmem [shape: f32[1024,16], index: 0, kind: input, shape index: {}]   ;;  %s1771_s3 = inlined_call_operand.vmem [shape: f32[32,1024], index: 3, kind: input, shape index: {}]   ;;  %s1772_s4 = inlined_call_operand.vmem [shape: f32[32,1], index: 4, kind: input, shape index: {}]   ;;  %s1773_s1 = inlined_call_operand.vmem [shape: f32[768,16], index: 1, kind: input, shape index: {}]   ;;  %s1774_s5 = inlined_call_operand.vmem [shape: f32[32,768], index: 5, kind: input, shape index: {}]   ;;  %s1775_s6 = inlined_call_operand.vmem [shape: f32[32,1], index: 6, kind: input, shape index: {}]   ;;  %s1776_s2 = inlined_call_operand.vmem [shape: f32[32,16], index: 2, kind: input, shape index: {}]   ;;  %s1777_s7 = inlined_call_operand.vmem [shape: f32[32,16], index: 7, kind: output, shape index: {}]  }
   0x1   :  { %v73_v0 = vld [vmem:[%s1770_s0 + $0x78] sm:$0xff]  ;;  %v72_v2 = vld [vmem:[%s1770_s0 + $0x70] sm:$0xff]  ;;  %v71_v6 = vld [vmem:[%s1770_s0 + $0x68] sm:$0xff] }
   0x2   :  { %v105_v1 = vld [vmem:[%s1770_s0 + $0x178] sm:$0xff]  ;;  %210 = vmatpush.msra.mxu0 %v73_v0  ;;  %v104_v4 = vld [vmem:[%s1770_s0 + $0x170] sm:$0xff]  ;;  %v103_v8 = vld [vmem:[%s1770_s0 + $0x168] sm:$0xff] }
   0x3   :  { %268 = vmatpush.msra.mxu2 %v105_v1  ;;  %v89_v3 = vld [vmem:[%s1770_s0 + $0xf8] sm:$0xff]  ;;  %v88_v7 = vld [vmem:[%s1770_s0 + $0xf0] sm:$0xff]  ;;  %v87_v10 = vld [vmem:[%s1770_s0 + $0xe8] sm:$0xff] }
   0x4   :  { %v121_v5 = vld [vmem:[%s1770_s0 + $0x1f8] sm:$0xff]  ;;  %239 = vmatpush.msra.mxu1 %v89_v3  ;;  %211 = vmatpush.msra.mxu0 %v72_v2  ;;  %v120_v9 = vld [vmem:[%s1770_s0 + $0x1f0] sm:$0xff]  ;;  %v70_v11 = vld [vmem:[%s1770_s0 + $0x60] sm:$0xff] }
   0x5   :  { %297 = vmatpush.msra.mxu3 %v121_v5  ;;  %269 = vmatpush.msra.mxu2 %v104_v4  ;;  %v102_v12 = vld [vmem:[%s1770_s0 + $0x160] sm:$0xff]  ;;  %v119_v13 = vld [vmem:[%s1770_s0 + $0x1e8] sm:$0xff]  ;;  %v69_v16 = vld [vmem:[%s1770_s0 + $0x58] sm:$0xff] }
   0x6   :  { %240 = vmatpush.msra.mxu1 %v88_v7  ;;  %212 = vmatpush.msra.mxu0 %v71_v6  ;;  %v86_v14 = vld [vmem:[%s1770_s0 + $0xe0] sm:$0xff]  ;;  %v101_v17 = vld [vmem:[%s1770_s0 + $0x158] sm:$0xff]  ;;  %v68_v20 = vld [vmem:[%s1770_s0 + $0x50] sm:$0xff] }
   0x7   :  { %298 = vmatpush.msra.mxu3 %v120_v9  ;;  %270 = vmatpush.msra.mxu2 %v103_v8  ;;  %v118_v15 = vld [vmem:[%s1770_s0 + $0x1e0] sm:$0xff]  ;;  %v85_v18 = vld [vmem:[%s1770_s0 + $0xd8] sm:$0xff]  ;;  %v100_v21 = vld [vmem:[%s1770_s0 + $0x150] sm:$0xff] }
   0x8   :  { %241 = vmatpush.msra.mxu1 %v87_v10  ;;  %213 = vmatpush.msra.mxu0 %v70_v11  ;;  %v117_v19 = vld [vmem:[%s1770_s0 + $0x1d8] sm:$0xff]  ;;  %v84_v22 = vld [vmem:[%s1770_s0 + $0xd0] sm:$0xff]  ;;  %v67_v24 = vld [vmem:[%s1770_s0 + $0x48] sm:$0xff] }
   0x9   :  { %299 = vmatpush.msra.mxu3 %v119_v13  ;;  %271 = vmatpush.msra.mxu2 %v102_v12  ;;  %v116_v23 = vld [vmem:[%s1770_s0 + $0x1d0] sm:$0xff]  ;;  %v99_v25 = vld [vmem:[%s1770_s0 + $0x148] sm:$0xff]  ;;  %v66_v28 = vld [vmem:[%s1770_s0 + $0x40] sm:$0xff] }
   0xa   :  { %242 = vmatpush.msra.mxu1 %v86_v14  ;;  %214 = vmatpush.msra.mxu0 %v69_v16  ;;  %v83_v26 = vld [vmem:[%s1770_s0 + $0xc8] sm:$0xff]  ;;  %v98_v29 = vld [vmem:[%s1770_s0 + $0x140] sm:$0xff]  ;;  %v65_v32 = vld [vmem:[%s1770_s0 + $0x38] sm:$0xff] }
   0xb   :  { %300 = vmatpush.msra.mxu3 %v118_v15  ;;  %272 = vmatpush.msra.mxu2 %v101_v17  ;;  %v115_v27 = vld [vmem:[%s1770_s0 + $0x1c8] sm:$0xff]  ;;  %v82_v30 = vld [vmem:[%s1770_s0 + $0xc0] sm:$0xff]  ;;  %v97_v33 = vld [vmem:[%s1770_s0 + $0x138] sm:$0xff] }
   0xc   :  { %243 = vmatpush.msra.mxu1 %v85_v18  ;;  %215 = vmatpush.msra.mxu0 %v68_v20  ;;  %v114_v31 = vld [vmem:[%s1770_s0 + $0x1c0] sm:$0xff]  ;;  %v81_v34 = vld [vmem:[%s1770_s0 + $0xb8] sm:$0xff]  ;;  %v64_v36 = vld [vmem:[%s1770_s0 + $0x30] sm:$0xff] }
   0xd   :  { %301 = vmatpush.msra.mxu3 %v117_v19  ;;  %273 = vmatpush.msra.mxu2 %v100_v21  ;;  %v113_v35 = vld [vmem:[%s1770_s0 + $0x1b8] sm:$0xff]  ;;  %v96_v37 = vld [vmem:[%s1770_s0 + $0x130] sm:$0xff]  ;;  %v63_v40 = vld [vmem:[%s1770_s0 + $0x28] sm:$0xff] }
   0xe   :  { %244 = vmatpush.msra.mxu1 %v84_v22  ;;  %216 = vmatpush.msra.mxu0 %v67_v24  ;;  %v80_v38 = vld [vmem:[%s1770_s0 + $0xb0] sm:$0xff]  ;;  %v95_v41 = vld [vmem:[%s1770_s0 + $0x128] sm:$0xff]  ;;  %v62_v44 = vld [vmem:[%s1770_s0 + $0x20] sm:$0xff] }
   0xf   :  { %302 = vmatpush.msra.mxu3 %v116_v23  ;;  %274 = vmatpush.msra.mxu2 %v99_v25  ;;  %v112_v39 = vld [vmem:[%s1770_s0 + $0x1b0] sm:$0xff]  ;;  %v79_v42 = vld [vmem:[%s1770_s0 + $0xa8] sm:$0xff]  ;;  %v94_v45 = vld [vmem:[%s1770_s0 + $0x120] sm:$0xff] }
  0x10   :  { %245 = vmatpush.msra.mxu1 %v83_v26  ;;  %217 = vmatpush.msra.mxu0 %v66_v28  ;;  %v111_v43 = vld [vmem:[%s1770_s0 + $0x1a8] sm:$0xff]  ;;  %v78_v46 = vld [vmem:[%s1770_s0 + $0xa0] sm:$0xff]  ;;  %v61_v48 = vld [vmem:[%s1770_s0 + $0x18] sm:$0xff] }
  0x11   :  { %303 = vmatpush.msra.mxu3 %v115_v27  ;;  %275 = vmatpush.msra.mxu2 %v98_v29  ;;  %v110_v47 = vld [vmem:[%s1770_s0 + $0x1a0] sm:$0xff]  ;;  %v93_v49 = vld [vmem:[%s1770_s0 + $0x118] sm:$0xff]  ;;  %v60_v52 = vld [vmem:[%s1770_s0 + $0x10] sm:$0xff] }
  0x12   :  { %246 = vmatpush.msra.mxu1 %v82_v30  ;;  %218 = vmatpush.msra.mxu0 %v65_v32  ;;  %v77_v50 = vld [vmem:[%s1770_s0 + $0x98] sm:$0xff]  ;;  %v92_v53 = vld [vmem:[%s1770_s0 + $0x110] sm:$0xff]  ;;  %v59_v56 = vld [vmem:[%s1770_s0 + $0x8] sm:$0xff] }
  0x13   :  { %304 = vmatpush.msra.mxu3 %v114_v31  ;;  %276 = vmatpush.msra.mxu2 %v97_v33  ;;  %v109_v51 = vld [vmem:[%s1770_s0 + $0x198] sm:$0xff]  ;;  %v76_v54 = vld [vmem:[%s1770_s0 + $0x90] sm:$0xff]  ;;  %v91_v57 = vld [vmem:[%s1770_s0 + $0x108] sm:$0xff] }
  0x14   :  { %247 = vmatpush.msra.mxu1 %v81_v34  ;;  %219 = vmatpush.msra.mxu0 %v64_v36  ;;  %v108_v55 = vld [vmem:[%s1770_s0 + $0x190] sm:$0xff]  ;;  %v75_v58 = vld [vmem:[%s1770_s0 + $0x88] sm:$0xff]  ;;  %v58_v60 = vld [vmem:[%s1770_s0] sm:$0xff] }
  0x15   :  { %305 = vmatpush.msra.mxu3 %v113_v35  ;;  %277 = vmatpush.msra.mxu2 %v96_v37  ;;  %v107_v59 = vld [vmem:[%s1770_s0 + $0x188] sm:$0xff]  ;;  %v90_v61 = vld [vmem:[%s1770_s0 + $0x100] sm:$0xff]  ;;  %v28_v63 = vld [vmem:[%s1771_s3 + $0x10] sm:$0xff]  ;;  %v825_v35 = vmov 0  }
  0x16   :  { %248 = vmatpush.msra.mxu1 %v80_v38  ;;  %220 = vmatpush.msra.mxu0 %v63_v40  ;;  %v26_v62 = vld [vmem:[%s1771_s3] sm:$0xff]  ;;  %v169_v0 = vld [vmem:[%s1770_s0 + $0x378] sm:$0xff]  ;;  %v27_v4 = vld [vmem:[%s1771_s3 + $0x8] sm:$0xff] }
  0x17   :  { %306 = vmatpush.msra.mxu3 %v112_v39  ;;  %278 = vmatpush.msra.mxu2 %v95_v41  ;;  %v74_v1 = vld [vmem:[%s1770_s0 + $0x80] sm:$0xff]  ;;  %v137_v3 = vld [vmem:[%s1770_s0 + $0x278] sm:$0xff]  ;;  %v168_v6 = vld [vmem:[%s1770_s0 + $0x370] sm:$0xff] }
  0x18   :  { %249 = vmatpush.msra.mxu1 %v79_v42  ;;  %221 = vmatpush.msra.mxu0 %v62_v44  ;;  %v106_v2 = vld [vmem:[%s1770_s0 + $0x180] sm:$0xff]  ;;  %v29_v5 = vld [vmem:[%s1771_s3 + $0x18] sm:$0xff]  ;;  %v136_v8 = vld [vmem:[%s1770_s0 + $0x270] sm:$0xff] }
  0x19   :  { %307 = vmatpush.msra.mxu3 %v111_v43  ;;  %279 = vmatpush.msra.mxu2 %v94_v45  ;;  %v185_v7 = vld [vmem:[%s1770_s0 + $0x3f8] sm:$0xff]  ;;  %v167_v10 = vld [vmem:[%s1770_s0 + $0x368] sm:$0xff]  ;;  %v184_v11 = vld [vmem:[%s1770_s0 + $0x3f0] sm:$0xff] }
  0x1a   :  { %250 = vmatpush.msra.mxu1 %v78_v46  ;;  %222 = vmatpush.msra.mxu0 %v61_v48  ;;  %v153_v9 = vld [vmem:[%s1770_s0 + $0x2f8] sm:$0xff]  ;;  %v135_v12 = vld [vmem:[%s1770_s0 + $0x268] sm:$0xff]  ;;  %v152_v13 = vld [vmem:[%s1770_s0 + $0x2f0] sm:$0xff] }
  0x1b   :  { %308 = vmatpush.msra.mxu3 %v110_v47  ;;  %280 = vmatpush.msra.mxu2 %v93_v49  ;;  %v166_v14 = vld [vmem:[%s1770_s0 + $0x360] sm:$0xff]  ;;  %v183_v15 = vld [vmem:[%s1770_s0 + $0x3e8] sm:$0xff]  ;;  %v36_v19 = vld [vmem:[%s1771_s3 + $0x50] sm:$0xff] }
  0x1c   :  { %251 = vmatpush.msra.mxu1 %v77_v50  ;;  %223 = vmatpush.msra.mxu0 %v60_v52  ;;  %v134_v16 = vld [vmem:[%s1770_s0 + $0x260] sm:$0xff]  ;;  %v151_v17 = vld [vmem:[%s1770_s0 + $0x2e8] sm:$0xff]  ;;  %v165_v20 = vld [vmem:[%s1770_s0 + $0x358] sm:$0xff] }
  0x1d   :  { %309 = vmatpush.msra.mxu3 %v109_v51  ;;  %281 = vmatpush.msra.mxu2 %v92_v53  ;;  %v34_v18 = vld [vmem:[%s1771_s3 + $0x40] sm:$0xff]  ;;  %v133_v22 = vld [vmem:[%s1770_s0 + $0x258] sm:$0xff]  ;;  %v35_v24 = vld [vmem:[%s1771_s3 + $0x48] sm:$0xff] }
  0x1e   :  { %252 = vmatpush.msra.mxu1 %v76_v54  ;;  %224 = vmatpush.msra.mxu0 %v59_v56  ;;  %v182_v21 = vld [vmem:[%s1770_s0 + $0x3e0] sm:$0xff]  ;;  %v37_v25 = vld [vmem:[%s1771_s3 + $0x58] sm:$0xff]  ;;  %v164_v26 = vld [vmem:[%s1770_s0 + $0x350] sm:$0xff] }
  0x1f   :  { %310 = vmatpush.msra.mxu3 %v108_v55  ;;  %282 = vmatpush.msra.mxu2 %v91_v57  ;;  %v150_v23 = vld [vmem:[%s1770_s0 + $0x2e0] sm:$0xff]  ;;  %v181_v27 = vld [vmem:[%s1770_s0 + $0x3d8] sm:$0xff]  ;;  %v132_v28 = vld [vmem:[%s1770_s0 + $0x250] sm:$0xff] }
  0x20   :  { %253 = vmatpush.msra.mxu1 %v75_v58  ;;  %225 = vmatpush.msra.mxu0 %v58_v60  ;;  %v149_v29 = vld [vmem:[%s1770_s0 + $0x2d8] sm:$0xff]  ;;  %v163_v30 = vld [vmem:[%s1770_s0 + $0x348] sm:$0xff]  ;;  %v180_v31 = vld [vmem:[%s1770_s0 + $0x3d0] sm:$0xff] }
  0x21   :  { %311 = vmatpush.msra.mxu3 %v107_v59  ;;  %283 = vmatpush.msra.mxu2 %v90_v61  ;;  %v186_v32 = vld [vmem:[%s1772_s4] sm:$0xff]  ;;  %v131_v33 = vld [vmem:[%s1770_s0 + $0x248] sm:$0xff]  ;;  %v148_v34 = vld [vmem:[%s1770_s0 + $0x2d0] sm:$0xff] }
  0x22   :  { %226 = vmatmul.f32.vlgmr.msra.gmra.mxu0 %v26_v62  ;;  %284 = vmatmul.f32.vlgmr.msra.gmra.mxu2 %v28_v63  ;;  %v162_v36 = vld [vmem:[%s1770_s0 + $0x340] sm:$0xff]  ;;  %v179_v37 = vld [vmem:[%s1770_s0 + $0x3c8] sm:$0xff]  ;;  %v44_v41 = vld [vmem:[%s1771_s3 + $0x90] sm:$0xff] }
  0x23   :  { %384 = vmatpush.msrb.mxu2 %v169_v0  ;;  %254 = vmatpush.msra.mxu1 %v74_v1  ;;  %v130_v38 = vld [vmem:[%s1770_s0 + $0x240] sm:$0xff]  ;;  %v147_v39 = vld [vmem:[%s1770_s0 + $0x2c8] sm:$0xff]  ;;  %v161_v42 = vld [vmem:[%s1770_s0 + $0x338] sm:$0xff] }
  0x24   :  { %312 = vmatpush.msra.mxu3 %v106_v2  ;;  %326 = vmatpush.msrb.mxu0 %v137_v3  ;;  %v42_v40 = vld [vmem:[%s1771_s3 + $0x80] sm:$0xff]  ;;  %v129_v44 = vld [vmem:[%s1770_s0 + $0x238] sm:$0xff]  ;;  %v43_v46 = vld [vmem:[%s1771_s3 + $0x88] sm:$0xff] }
  0x25   :  { %255 = vmatmul.f32.vlgmr.msra.gmra.mxu1 %v27_v4  ;;  %313 = vmatmul.f32.vlgmr.msra.gmra.mxu3 %v29_v5  ;;  %v178_v43 = vld [vmem:[%s1770_s0 + $0x3c0] sm:$0xff]  ;;  %v45_v47 = vld [vmem:[%s1771_s3 + $0x98] sm:$0xff]  ;;  %v160_v48 = vld [vmem:[%s1770_s0 + $0x330] sm:$0xff] }
  0x26   :  { %385 = vmatpush.msrb.mxu2 %v168_v6  ;;  %413 = vmatpush.msrb.mxu3 %v185_v7  ;;  %v146_v45 = vld [vmem:[%s1770_s0 + $0x2c0] sm:$0xff]  ;;  %v177_v49 = vld [vmem:[%s1770_s0 + $0x3b8] sm:$0xff]  ;;  %v128_v50 = vld [vmem:[%s1770_s0 + $0x230] sm:$0xff] }
  0x27   :  { %327 = vmatpush.msrb.mxu0 %v136_v8  ;;  %355 = vmatpush.msrb.mxu1 %v153_v9  ;;  %v145_v51 = vld [vmem:[%s1770_s0 + $0x2b8] sm:$0xff]  ;;  %v159_v52 = vld [vmem:[%s1770_s0 + $0x328] sm:$0xff]  ;;  %v176_v53 = vld [vmem:[%s1770_s0 + $0x3b0] sm:$0xff] }
  0x28   :  { %386 = vmatpush.msrb.mxu2 %v167_v10  ;;  %414 = vmatpush.msrb.mxu3 %v184_v11  ;;  %v187_v54 = vld [vmem:[%s1772_s4 + $0x8] sm:$0xff]  ;;  %v144_v56 = vld [vmem:[%s1770_s0 + $0x2b0] sm:$0xff]  ;;  %v158_v57 = vld [vmem:[%s1770_s0 + $0x320] sm:$0xff] }
  0x29   :  { %328 = vmatpush.msrb.mxu0 %v135_v12  ;;  %356 = vmatpush.msrb.mxu1 %v152_v13  ;;  %v127_v55 = vld [vmem:[%s1770_s0 + $0x228] sm:$0xff]  ;;  %v126_v59 = vld [vmem:[%s1770_s0 + $0x220] sm:$0xff]  ;;  %v52_v62 = vld [vmem:[%s1771_s3 + $0xd0] sm:$0xff] }
  0x2a   :  { %387 = vmatpush.msrb.mxu2 %v166_v14  ;;  %415 = vmatpush.msrb.mxu3 %v183_v15  ;;  %v175_v58 = vld [vmem:[%s1770_s0 + $0x3a8] sm:$0xff]  ;;  %v50_v61 = vld [vmem:[%s1771_s3 + $0xc0] sm:$0xff]  ;;  %v157_v0 = vld [vmem:[%s1770_s0 + $0x318] sm:$0xff] }
  0x2b   :  { %329 = vmatpush.msrb.mxu0 %v134_v16  ;;  %357 = vmatpush.msrb.mxu1 %v151_v17  ;;  %v143_v60 = vld [vmem:[%s1770_s0 + $0x2a8] sm:$0xff]  ;;  %v174_v63 = vld [vmem:[%s1770_s0 + $0x3a0] sm:$0xff]  ;;  %v125_v1 = vld [vmem:[%s1770_s0 + $0x218] sm:$0xff] }
  0x2c   :  { %229 = vmatmul.f32.gmra.mxu0 %v34_v18  ;;  %287 = vmatmul.f32.gmra.mxu2 %v36_v19  ;;  %v142_v2 = vld [vmem:[%s1770_s0 + $0x2a0] sm:$0xff]  ;;  %v53_v3 = vld [vmem:[%s1771_s3 + $0xd8] sm:$0xff]  ;;  %v51_v4 = vld [vmem:[%s1771_s3 + $0xc8] sm:$0xff] }
  0x2d   :  { %388 = vmatpush.msrb.mxu2 %v165_v20  ;;  %416 = vmatpush.msrb.mxu3 %v182_v21  ;;  %v156_v5 = vld [vmem:[%s1770_s0 + $0x310] sm:$0xff]  ;;  %v173_v6 = vld [vmem:[%s1770_s0 + $0x398] sm:$0xff]  ;;  %v155_v9 = vld [vmem:[%s1770_s0 + $0x308] sm:$0xff] }
  0x2e   :  { %330 = vmatpush.msrb.mxu0 %v133_v22  ;;  %358 = vmatpush.msrb.mxu1 %v150_v23  ;;  %v124_v7 = vld [vmem:[%s1770_s0 + $0x210] sm:$0xff]  ;;  %v141_v8 = vld [vmem:[%s1770_s0 + $0x298] sm:$0xff]  ;;  %v123_v12 = vld [vmem:[%s1770_s0 + $0x208] sm:$0xff] }
  0x2f   :  { %258 = vmatmul.f32.gmra.mxu1 %v35_v24  ;;  %316 = vmatmul.f32.gmra.mxu3 %v37_v25  ;;  %v172_v10 = vld [vmem:[%s1770_s0 + $0x390] sm:$0xff]  ;;  %v154_v14 = vld [vmem:[%s1770_s0 + $0x300] sm:$0xff]  ;;  %v171_v15 = vld [vmem:[%s1770_s0 + $0x388] sm:$0xff] }
  0x30   :  { %389 = vmatpush.msrb.mxu2 %v164_v26  ;;  %417 = vmatpush.msrb.mxu3 %v181_v27  ;;  %v188_v11 = vld [vmem:[%s1772_s4 + $0x10] sm:$0xff]  ;;  %v122_v16 = vld [vmem:[%s1770_s0 + $0x200] sm:$0xff]  ;;  %v139_v17 = vld [vmem:[%s1770_s0 + $0x288] sm:$0xff] }
  0x31   :  { %331 = vmatpush.msrb.mxu0 %v132_v28  ;;  %359 = vmatpush.msrb.mxu1 %v149_v29  ;;  %v140_v13 = vld [vmem:[%s1770_s0 + $0x290] sm:$0xff]  ;;  %v30_v18 = vld [vmem:[%s1771_s3 + $0x20] sm:$0xff]  ;;  %v513_v21 = vld [vmem:[%s1773_s1 + $0x178] sm:$0xff] }
  0x32   :  { %822 = vset.pattern.permute.xlu0 %v825_v35  ;;  %390 = vmatpush.msrb.mxu2 %v163_v30  ;;  %v32_v19 = vld [vmem:[%s1771_s3 + $0x30] sm:$0xff]  ;;  %v170_v20 = vld [vmem:[%s1770_s0 + $0x380] sm:$0xff]  ;;  %v481_v23 = vld [vmem:[%s1773_s1 + $0x78] sm:$0xff] }
  0x33   :  { %418 = vmatpush.msrb.mxu3 %v180_v31  ;;  %192 = vperm.xlu0 %822, %v186_v32   ;;  %v138_v22 = vld [vmem:[%s1770_s0 + $0x280] sm:$0xff]  ;;  %v31_v24 = vld [vmem:[%s1771_s3 + $0x28] sm:$0xff]  ;;  %v33_v25 = vld [vmem:[%s1771_s3 + $0x38] sm:$0xff] }
  0x34   :  { %332 = vmatpush.msrb.mxu0 %v131_v33  ;;  %360 = vmatpush.msrb.mxu1 %v148_v34  ;;  %v512_v26 = vld [vmem:[%s1773_s1 + $0x170] sm:$0xff]  ;;  %v529_v27 = vld [vmem:[%s1773_s1 + $0x1f8] sm:$0xff]  ;;  %v511_v30 = vld [vmem:[%s1773_s1 + $0x168] sm:$0xff] }
  0x35   :  { %391 = vmatpush.msrb.mxu2 %v162_v36  ;;  %419 = vmatpush.msrb.mxu3 %v179_v37  ;;  %v480_v28 = vld [vmem:[%s1773_s1 + $0x70] sm:$0xff]  ;;  %v497_v29 = vld [vmem:[%s1773_s1 + $0xf8] sm:$0xff]  ;;  %v479_v33 = vld [vmem:[%s1773_s1 + $0x68] sm:$0xff] }
  0x36   :  { %333 = vmatpush.msrb.mxu0 %v130_v38  ;;  %361 = vmatpush.msrb.mxu1 %v147_v39  ;;  %v528_v31 = vld [vmem:[%s1773_s1 + $0x1f0] sm:$0xff]  ;;  %v189_v32 = vld [vmem:[%s1772_s4 + $0x18] sm:$0xff]  ;;  %v510_v36 = vld [vmem:[%s1773_s1 + $0x160] sm:$0xff] }
  0x37   :  { %232 = vmatmul.f32.gmra.mxu0 %v42_v40  ;;  %290 = vmatmul.f32.gmra.mxu2 %v44_v41  ;;  %v496_v34 = vld [vmem:[%s1773_s1 + $0xf0] sm:$0xff]  ;;  %v527_v37 = vld [vmem:[%s1773_s1 + $0x1e8] sm:$0xff]  ;;  %v478_v38 = vld [vmem:[%s1773_s1 + $0x60] sm:$0xff] }
  0x38   :  { %392 = vmatpush.msrb.mxu2 %v161_v42  ;;  %420 = vmatpush.msrb.mxu3 %v178_v43  ;;  %v495_v39 = vld [vmem:[%s1773_s1 + $0xe8] sm:$0xff]  ;;  %v38_v40 = vld [vmem:[%s1771_s3 + $0x60] sm:$0xff]  ;;  %v40_v41 = vld [vmem:[%s1771_s3 + $0x70] sm:$0xff] }
  0x39   :  { %334 = vmatpush.msrb.mxu0 %v129_v44  ;;  %362 = vmatpush.msrb.mxu1 %v146_v45  ;;  %v509_v42 = vld [vmem:[%s1773_s1 + $0x158] sm:$0xff]  ;;  %v526_v43 = vld [vmem:[%s1773_s1 + $0x1e0] sm:$0xff] }
  0x3a   :  { %261 = vmatmul.f32.gmra.mxu1 %v43_v46  ;;  %319 = vmatmul.f32.gmra.mxu3 %v45_v47  ;;  %v477_v44 = vld [vmem:[%s1773_s1 + $0x58] sm:$0xff]  ;;  %v494_v45 = vld [vmem:[%s1773_s1 + $0xe0] sm:$0xff]  ;;  %v39_v46 = vld [vmem:[%s1771_s3 + $0x68] sm:$0xff] }
  0x3b   :  { %393 = vmatpush.msrb.mxu2 %v160_v48  ;;  %421 = vmatpush.msrb.mxu3 %v177_v49  ;;  %v41_v47 = vld [vmem:[%s1771_s3 + $0x78] sm:$0xff]  ;;  %v508_v48 = vld [vmem:[%s1773_s1 + $0x150] sm:$0xff] }
  0x3c   :  { %335 = vmatpush.msrb.mxu0 %v128_v50  ;;  %363 = vmatpush.msrb.mxu1 %v145_v51  ;;  %v525_v49 = vld [vmem:[%s1773_s1 + $0x1d8] sm:$0xff]  ;;  %v476_v50 = vld [vmem:[%s1773_s1 + $0x50] sm:$0xff] }
  0x3d   :  { %394 = vmatpush.msrb.mxu2 %v159_v52  ;;  %422 = vmatpush.msrb.mxu3 %v176_v53  ;;  %v493_v51 = vld [vmem:[%s1773_s1 + $0xd8] sm:$0xff]  ;;  %v507_v52 = vld [vmem:[%s1773_s1 + $0x148] sm:$0xff]  ;;  %v524_v53 = vld [vmem:[%s1773_s1 + $0x1d0] sm:$0xff] }
  0x3e   :  { %197 = vperm.xlu0 %822, %v187_v54   ;;  %336 = vmatpush.msrb.mxu0 %v127_v55  ;;  %v475_v54 = vld [vmem:[%s1773_s1 + $0x48] sm:$0xff]  ;;  %v492_v55 = vld [vmem:[%s1773_s1 + $0xd0] sm:$0xff] }
  0x3f   :  { %364 = vmatpush.msrb.mxu1 %v144_v56  ;;  %395 = vmatpush.msrb.mxu2 %v158_v57  ;;  %v506_v56 = vld [vmem:[%s1773_s1 + $0x140] sm:$0xff]  ;;  %v523_v57 = vld [vmem:[%s1773_s1 + $0x1c8] sm:$0xff] }
  0x40   :  { %423 = vmatpush.msrb.mxu3 %v175_v58  ;;  %337 = vmatpush.msrb.mxu0 %v126_v59  ;;  %v474_v58 = vld [vmem:[%s1773_s1 + $0x40] sm:$0xff]  ;;  %v491_v59 = vld [vmem:[%s1773_s1 + $0xc8] sm:$0xff] }
  0x41   :  { %365 = vmatpush.msrb.mxu1 %v143_v60  ;;  %235 = vmatmul.f32.gmra.mxu0 %v50_v61  ;;  %v46_v60 = vld [vmem:[%s1771_s3 + $0xa0] sm:$0xff]  ;;  %v48_v61 = vld [vmem:[%s1771_s3 + $0xb0] sm:$0xff] }
  0x42   :  { %293 = vmatmul.f32.gmra.mxu2 %v52_v62  ;;  %424 = vmatpush.msrb.mxu3 %v174_v63  ;;  %v505_v62 = vld [vmem:[%s1773_s1 + $0x138] sm:$0xff]  ;;  %v522_v63 = vld [vmem:[%s1773_s1 + $0x1c0] sm:$0xff] }
  0x43   :  { %396 = vmatpush.msrb.mxu2 %v157_v0  ;;  %338 = vmatpush.msrb.mxu0 %v125_v1  ;;  %v473_v0 = vld [vmem:[%s1773_s1 + $0x38] sm:$0xff]  ;;  %v490_v1 = vld [vmem:[%s1773_s1 + $0xc0] sm:$0xff] }
  0x44   :  { %366 = vmatpush.msrb.mxu1 %v142_v2  ;;  %322 = vmatmul.f32.gmra.mxu3 %v53_v3  ;;  %v47_v2 = vld [vmem:[%s1771_s3 + $0xa8] sm:$0xff]  ;;  %v49_v3 = vld [vmem:[%s1771_s3 + $0xb8] sm:$0xff] }
  0x45   :  { %264 = vmatmul.f32.gmra.mxu1 %v51_v4  ;;  %397 = vmatpush.msrb.mxu2 %v156_v5  ;;  %v504_v4 = vld [vmem:[%s1773_s1 + $0x130] sm:$0xff]  ;;  %v521_v5 = vld [vmem:[%s1773_s1 + $0x1b8] sm:$0xff] }
  0x46   :  { %425 = vmatpush.msrb.mxu3 %v173_v6  ;;  %339 = vmatpush.msrb.mxu0 %v124_v7  ;;  %v472_v6 = vld [vmem:[%s1773_s1 + $0x30] sm:$0xff]  ;;  %v489_v7 = vld [vmem:[%s1773_s1 + $0xb8] sm:$0xff] }
  0x47   :  { %367 = vmatpush.msrb.mxu1 %v141_v8  ;;  %823 = vset.pattern.permute.xlu1 %v825_v35  ;;  %v503_v8 = vld [vmem:[%s1773_s1 + $0x128] sm:$0xff] }
  0x48   :  { %398 = vmatpush.msrb.mxu2 %v155_v9  ;;  %426 = vmatpush.msrb.mxu3 %v172_v10  ;;  %v520_v9 = vld [vmem:[%s1773_s1 + $0x1b0] sm:$0xff]  ;;  %v471_v10 = vld [vmem:[%s1773_s1 + $0x28] sm:$0xff] }
  0x49   :  { %202 = vperm.xlu1 %823, %v188_v11   ;;  %340 = vmatpush.msrb.mxu0 %v123_v12  ;;  %v488_v11 = vld [vmem:[%s1773_s1 + $0xb0] sm:$0xff]  ;;  %v502_v12 = vld [vmem:[%s1773_s1 + $0x120] sm:$0xff] }
  0x4a   :  { %368 = vmatpush.msrb.mxu1 %v140_v13  ;;  %399 = vmatpush.msrb.mxu2 %v154_v14  ;;  %v519_v13 = vld [vmem:[%s1773_s1 + $0x1a8] sm:$0xff]  ;;  %v470_v14 = vld [vmem:[%s1773_s1 + $0x20] sm:$0xff] }
  0x4b   :  { %427 = vmatpush.msrb.mxu3 %v171_v15  ;;  %341 = vmatpush.msrb.mxu0 %v122_v16  ;;  %v487_v15 = vld [vmem:[%s1773_s1 + $0xa8] sm:$0xff]  ;;  %v54_v16 = vld [vmem:[%s1771_s3 + $0xe0] sm:$0xff] }
  0x4c   :  { %369 = vmatpush.msrb.mxu1 %v139_v17  ;;  %342 = vmatmul.f32.vlgmr.msrb.gmra.mxu0 %v30_v18  ;;  %v56_v17 = vld [vmem:[%s1771_s3 + $0xf0] sm:$0xff]  ;;  %v501_v18 = vld [vmem:[%s1773_s1 + $0x118] sm:$0xff] }
  0x4d   :  { %400 = vmatmul.f32.vlgmr.msrb.gmra.mxu2 %v32_v19  ;;  %428 = vmatpush.msrb.mxu3 %v170_v20  ;;  %v518_v19 = vld [vmem:[%s1773_s1 + $0x1a0] sm:$0xff]  ;;  %v469_v20 = vld [vmem:[%s1773_s1 + $0x18] sm:$0xff] }
  0x4e   :  { %620 = vmatpush.msra.mxu2 %v513_v21  ;;  %370 = vmatpush.msrb.mxu1 %v138_v22  ;;  %v486_v21 = vld [vmem:[%s1773_s1 + $0xa0] sm:$0xff]  ;;  %v55_v22 = vld [vmem:[%s1771_s3 + $0xe8] sm:$0xff] }
  0x4f   :  { %562 = vmatpush.msra.mxu0 %v481_v23  ;;  %371 = vmatmul.f32.vlgmr.msrb.gmra.mxu1 %v31_v24  ;;  %v57_v23 = vld [vmem:[%s1771_s3 + $0xf8] sm:$0xff]  ;;  %v500_v24 = vld [vmem:[%s1773_s1 + $0x110] sm:$0xff] }
  0x50   :  { %429 = vmatmul.f32.vlgmr.msrb.gmra.mxu3 %v33_v25  ;;  %621 = vmatpush.msra.mxu2 %v512_v26  ;;  %v517_v25 = vld [vmem:[%s1773_s1 + $0x198] sm:$0xff]  ;;  %v468_v26 = vld [vmem:[%s1773_s1 + $0x10] sm:$0xff] }
  0x51   :  { %649 = vmatpush.msra.mxu3 %v529_v27  ;;  %563 = vmatpush.msra.mxu0 %v480_v28  ;;  %v485_v27 = vld [vmem:[%s1773_s1 + $0x98] sm:$0xff]  ;;  %v499_v28 = vld [vmem:[%s1773_s1 + $0x108] sm:$0xff] }
  0x52   :  { %591 = vmatpush.msra.mxu1 %v497_v29  ;;  %622 = vmatpush.msra.mxu2 %v511_v30  ;;  %v516_v29 = vld [vmem:[%s1773_s1 + $0x190] sm:$0xff]  ;;  %v467_v30 = vld [vmem:[%s1773_s1 + $0x8] sm:$0xff] }
  0x53   :  { %650 = vmatpush.msra.mxu3 %v528_v31  ;;  %207 = vperm.xlu1 %823, %v189_v32   ;;  %v484_v31 = vld [vmem:[%s1773_s1 + $0x90] sm:$0xff]  ;;  %v498_v32 = vld [vmem:[%s1773_s1 + $0x100] sm:$0xff] }
  0x54   :  { %564 = vmatpush.msra.mxu0 %v479_v33  ;;  %592 = vmatpush.msra.mxu1 %v496_v34  ;;  %v515_v33 = vld [vmem:[%s1773_s1 + $0x188] sm:$0xff]  ;;  %v466_v34 = vld [vmem:[%s1773_s1] sm:$0xff] }
  0x55   :  { %623 = vmatpush.msra.mxu2 %v510_v36  ;;  %651 = vmatpush.msra.mxu3 %v527_v37  ;;  %v483_v36 = vld [vmem:[%s1773_s1 + $0x88] sm:$0xff]  ;;  %v442_v37 = vld [vmem:[%s1774_s5] sm:$0xff] }
  0x56   :  { %565 = vmatpush.msra.mxu0 %v478_v38  ;;  %593 = vmatpush.msra.mxu1 %v495_v39  ;;  %v444_v38 = vld [vmem:[%s1774_s5 + $0x10] sm:$0xff]  ;;  %v514_v39 = vld [vmem:[%s1773_s1 + $0x180] sm:$0xff] }
  0x57   :  { %345 = vmatmul.f32.gmra.mxu0 %v38_v40  ;;  %403 = vmatmul.f32.gmra.mxu2 %v40_v41  ;;  %v545_v40 = vld [vmem:[%s1773_s1 + $0x278] sm:$0xff]  ;;  %v482_v41 = vld [vmem:[%s1773_s1 + $0x80] sm:$0xff] }
  0x58   :  { %624 = vmatpush.msra.mxu2 %v509_v42  ;;  %652 = vmatpush.msra.mxu3 %v526_v43  ;;  %v443_v42 = vld [vmem:[%s1774_s5 + $0x8] sm:$0xff]  ;;  %v445_v43 = vld [vmem:[%s1774_s5 + $0x18] sm:$0xff] }
  0x59   :  { %566 = vmatpush.msra.mxu0 %v477_v44  ;;  %594 = vmatpush.msra.mxu1 %v494_v45  ;;  %v544_v44 = vld [vmem:[%s1773_s1 + $0x270] sm:$0xff]  ;;  %v561_v45 = vld [vmem:[%s1773_s1 + $0x2f8] sm:$0xff] }
  0x5a   :  { %374 = vmatmul.f32.gmra.mxu1 %v39_v46  ;;  %432 = vmatmul.f32.gmra.mxu3 %v41_v47  ;;  %v543_v46 = vld [vmem:[%s1773_s1 + $0x268] sm:$0xff]  ;;  %v560_v47 = vld [vmem:[%s1773_s1 + $0x2f0] sm:$0xff] }
  0x5b   :  { %625 = vmatpush.msra.mxu2 %v508_v48  ;;  %653 = vmatpush.msra.mxu3 %v525_v49  ;;  %v542_v48 = vld [vmem:[%s1773_s1 + $0x260] sm:$0xff]  ;;  %v559_v49 = vld [vmem:[%s1773_s1 + $0x2e8] sm:$0xff] }
  0x5c   :  { %567 = vmatpush.msra.mxu0 %v476_v50  ;;  %595 = vmatpush.msra.mxu1 %v493_v51  ;;  %v448_v50 = vld [vmem:[%s1774_s5 + $0x30] sm:$0xff]  ;;  %v450_v51 = vld [vmem:[%s1774_s5 + $0x40] sm:$0xff] }
  0x5d   :  { %626 = vmatpush.msra.mxu2 %v507_v52  ;;  %654 = vmatpush.msra.mxu3 %v524_v53  ;;  %v541_v52 = vld [vmem:[%s1773_s1 + $0x258] sm:$0xff]  ;;  %v558_v53 = vld [vmem:[%s1773_s1 + $0x2e0] sm:$0xff] }
  0x5e   :  { %568 = vmatpush.msra.mxu0 %v475_v54  ;;  %596 = vmatpush.msra.mxu1 %v492_v55  ;;  %v449_v54 = vld [vmem:[%s1774_s5 + $0x38] sm:$0xff]  ;;  %v451_v55 = vld [vmem:[%s1774_s5 + $0x48] sm:$0xff] }
  0x5f   :  { %627 = vmatpush.msra.mxu2 %v506_v56  ;;  %655 = vmatpush.msra.mxu3 %v523_v57  ;;  %v540_v56 = vld [vmem:[%s1773_s1 + $0x250] sm:$0xff]  ;;  %v557_v57 = vld [vmem:[%s1773_s1 + $0x2d8] sm:$0xff] }
  0x60   :  { %569 = vmatpush.msra.mxu0 %v474_v58  ;;  %597 = vmatpush.msra.mxu1 %v491_v59  ;;  %v539_v58 = vld [vmem:[%s1773_s1 + $0x248] sm:$0xff]  ;;  %v556_v59 = vld [vmem:[%s1773_s1 + $0x2d0] sm:$0xff] }
  0x61   :  { %348 = vmatmul.f32.gmra.mxu0 %v46_v60  ;;  %406 = vmatmul.f32.gmra.mxu2 %v48_v61  ;;  %v538_v60 = vld [vmem:[%s1773_s1 + $0x240] sm:$0xff]  ;;  %v555_v61 = vld [vmem:[%s1773_s1 + $0x2c8] sm:$0xff] }
  0x62   :  { %628 = vmatpush.msra.mxu2 %v505_v62  ;;  %656 = vmatpush.msra.mxu3 %v522_v63  ;;  %v454_v62 = vld [vmem:[%s1774_s5 + $0x60] sm:$0xff]  ;;  %v456_v63 = vld [vmem:[%s1774_s5 + $0x70] sm:$0xff] }
  0x63   :  { %570 = vmatpush.msra.mxu0 %v473_v0  ;;  %598 = vmatpush.msra.mxu1 %v490_v1  ;;  %v537_v0 = vld [vmem:[%s1773_s1 + $0x238] sm:$0xff]  ;;  %v554_v1 = vld [vmem:[%s1773_s1 + $0x2c0] sm:$0xff] }
  0x64   :  { %377 = vmatmul.f32.gmra.mxu1 %v47_v2  ;;  %435 = vmatmul.f32.gmra.mxu3 %v49_v3  ;;  %v455_v2 = vld [vmem:[%s1774_s5 + $0x68] sm:$0xff]  ;;  %v457_v3 = vld [vmem:[%s1774_s5 + $0x78] sm:$0xff] }
  0x65   :  { %629 = vmatpush.msra.mxu2 %v504_v4  ;;  %657 = vmatpush.msra.mxu3 %v521_v5  ;;  %v536_v4 = vld [vmem:[%s1773_s1 + $0x230] sm:$0xff]  ;;  %v553_v5 = vld [vmem:[%s1773_s1 + $0x2b8] sm:$0xff] }
  0x66   :  { %571 = vmatpush.msra.mxu0 %v472_v6  ;;  %599 = vmatpush.msra.mxu1 %v489_v7  ;;  %v535_v6 = vld [vmem:[%s1773_s1 + $0x228] sm:$0xff]  ;;  %v552_v7 = vld [vmem:[%s1773_s1 + $0x2b0] sm:$0xff] }
  0x67   :  { %630 = vmatpush.msra.mxu2 %v503_v8  ;;  %658 = vmatpush.msra.mxu3 %v520_v9  ;;  %v534_v8 = vld [vmem:[%s1773_s1 + $0x220] sm:$0xff]  ;;  %v551_v9 = vld [vmem:[%s1773_s1 + $0x2a8] sm:$0xff] }
  0x68   :  { %572 = vmatpush.msra.mxu0 %v471_v10  ;;  %600 = vmatpush.msra.mxu1 %v488_v11  ;;  %v460_v10 = vld [vmem:[%s1774_s5 + $0x90] sm:$0xff]  ;;  %v462_v11 = vld [vmem:[%s1774_s5 + $0xa0] sm:$0xff] }
  0x69   :  { %631 = vmatpush.msra.mxu2 %v502_v12  ;;  %659 = vmatpush.msra.mxu3 %v519_v13  ;;  %v533_v12 = vld [vmem:[%s1773_s1 + $0x218] sm:$0xff]  ;;  %v550_v13 = vld [vmem:[%s1773_s1 + $0x2a0] sm:$0xff] }
  0x6a   :  { %573 = vmatpush.msra.mxu0 %v470_v14  ;;  %601 = vmatpush.msra.mxu1 %v487_v15  ;;  %v461_v14 = vld [vmem:[%s1774_s5 + $0x98] sm:$0xff]  ;;  %v463_v15 = vld [vmem:[%s1774_s5 + $0xa8] sm:$0xff] }
  0x6b   :  { %351 = vmatmul.f32.gmra.mxu0 %v54_v16  ;;  %409 = vmatmul.f32.gmra.mxu2 %v56_v17  ;;  %v532_v16 = vld [vmem:[%s1773_s1 + $0x210] sm:$0xff]  ;;  %v549_v17 = vld [vmem:[%s1773_s1 + $0x298] sm:$0xff] }
  0x6c   :  { %632 = vmatpush.msra.mxu2 %v501_v18  ;;  %660 = vmatpush.msra.mxu3 %v518_v19  ;;  %v531_v18 = vld [vmem:[%s1773_s1 + $0x208] sm:$0xff]  ;;  %v548_v19 = vld [vmem:[%s1773_s1 + $0x290] sm:$0xff] }
  0x6d   :  { %574 = vmatpush.msra.mxu0 %v469_v20  ;;  %602 = vmatpush.msra.mxu1 %v486_v21  ;;  %v530_v20 = vld [vmem:[%s1773_s1 + $0x200] sm:$0xff]  ;;  %v547_v21 = vld [vmem:[%s1773_s1 + $0x288] sm:$0xff] }
  0x6e   :  { %380 = vmatmul.f32.gmra.mxu1 %v55_v22  ;;  %438 = vmatmul.f32.gmra.mxu3 %v57_v23  ;;  %v446_v22 = vld [vmem:[%s1774_s5 + $0x20] sm:$0xff] }
  0x6f   :  { %633 = vmatpush.msra.mxu2 %v500_v24  ;;  %661 = vmatpush.msra.mxu3 %v517_v25  ;;  %v458_v23 = vld [vmem:[%s1774_s5 + $0x80] sm:$0xff]  ;;  %v447_v25 = vld [vmem:[%s1774_s5 + $0x28] sm:$0xff] }
  0x70   :  { %575 = vmatpush.msra.mxu0 %v468_v26  ;;  %603 = vmatpush.msra.mxu1 %v485_v27  ;;  %v546_v24 = vld [vmem:[%s1773_s1 + $0x280] sm:$0xff]  ;;  %v459_v26 = vld [vmem:[%s1774_s5 + $0x88] sm:$0xff]  ;;  %v743_v27 = vld [vmem:[%s1775_s6 + $0x18] sm:$0xff] }
  0x71   :  { %634 = vmatpush.msra.mxu2 %v499_v28  ;;  %662 = vmatpush.msra.mxu3 %v516_v29  ;;  %v742_v28 = vld [vmem:[%s1775_s6 + $0x10] sm:$0xff]  ;;  %v740_v29 = vld [vmem:[%s1775_s6] sm:$0xff] }
  0x72   :  { %576 = vmatpush.msra.mxu0 %v467_v30  ;;  %604 = vmatpush.msra.mxu1 %v484_v31  ;;  %v452_v30 = vld [vmem:[%s1774_s5 + $0x50] sm:$0xff] }
  0x73   :  { %635 = vmatpush.msra.mxu2 %v498_v32  ;;  %663 = vmatpush.msra.mxu3 %v515_v33  ;;  %v464_v31 = vld [vmem:[%s1774_s5 + $0xb0] sm:$0xff]  ;;  %v453_v33 = vld [vmem:[%s1774_s5 + $0x58] sm:$0xff] }
  0x74   :  { %577 = vmatpush.msra.mxu0 %v466_v34  ;;  %605 = vmatpush.msra.mxu1 %v483_v36  ;;  %v465_v34 = vld [vmem:[%s1774_s5 + $0xb8] sm:$0xff] }
  0x75   :  { %578 = vmatmul.f32.vlgmr.msra.gmra.mxu0 %v442_v37  ;;  %636 = vmatmul.f32.vlgmr.msra.gmra.mxu2 %v444_v38 }
  0x76   :  { %664 = vmatpush.msra.mxu3 %v514_v39  ;;  %789 = vmatpush.msrb.mxu2 %v545_v40  ;;  %v741_v39 = vld [vmem:[%s1775_s6 + $0x8] sm:$0xff] }
  0x77   :  { %606 = vmatpush.msra.mxu1 %v482_v41  ;;  %678 = vmatpush.msrb.mxu0 %v545_v40 }
  0x78   :  { %607 = vmatmul.f32.vlgmr.msra.gmra.mxu1 %v443_v42  ;;  %665 = vmatmul.f32.vlgmr.msra.gmra.mxu3 %v445_v43 }
  0x79   :  { %790 = vmatpush.msrb.mxu2 %v544_v44  ;;  %805 = vmatpush.msrb.mxu3 %v561_v45 }
  0x7a   :  { %679 = vmatpush.msrb.mxu0 %v544_v44  ;;  %707 = vmatpush.msrb.mxu1 %v561_v45 }
  0x7b   :  { %791 = vmatpush.msrb.mxu2 %v543_v46  ;;  %806 = vmatpush.msrb.mxu3 %v560_v47 }
  0x7c   :  { %680 = vmatpush.msrb.mxu0 %v543_v46  ;;  %708 = vmatpush.msrb.mxu1 %v560_v47 }
  0x7d   :  { %792 = vmatpush.msrb.mxu2 %v542_v48  ;;  %807 = vmatpush.msrb.mxu3 %v559_v49 }
  0x7e   :  { %681 = vmatpush.msrb.mxu0 %v542_v48  ;;  %709 = vmatpush.msrb.mxu1 %v559_v49 }
  0x7f   :  { %581 = vmatmul.f32.gmra.mxu0 %v448_v50  ;;  %639 = vmatmul.f32.gmra.mxu2 %v450_v51 }
  0x80   :  { %793 = vmatpush.msrb.mxu2 %v541_v52  ;;  %808 = vmatpush.msrb.mxu3 %v558_v53 }
  0x81   :  { %682 = vmatpush.msrb.mxu0 %v541_v52  ;;  %710 = vmatpush.msrb.mxu1 %v558_v53 }
  0x82   :  { %610 = vmatmul.f32.gmra.mxu1 %v449_v54  ;;  %668 = vmatmul.f32.gmra.mxu3 %v451_v55 }
  0x83   :  { %794 = vmatpush.msrb.mxu2 %v540_v56  ;;  %809 = vmatpush.msrb.mxu3 %v557_v57 }
  0x84   :  { %683 = vmatpush.msrb.mxu0 %v540_v56  ;;  %711 = vmatpush.msrb.mxu1 %v557_v57 }
  0x85   :  { %795 = vmatpush.msrb.mxu2 %v539_v58  ;;  %810 = vmatpush.msrb.mxu3 %v556_v59 }
  0x86   :  { %684 = vmatpush.msrb.mxu0 %v539_v58  ;;  %712 = vmatpush.msrb.mxu1 %v556_v59 }
  0x87   :  { %796 = vmatpush.msrb.mxu2 %v538_v60  ;;  %811 = vmatpush.msrb.mxu3 %v555_v61 }
  0x88   :  { %685 = vmatpush.msrb.mxu0 %v538_v60  ;;  %713 = vmatpush.msrb.mxu1 %v555_v61 }
  0x89   :  { %584 = vmatmul.f32.gmra.mxu0 %v454_v62  ;;  %642 = vmatmul.f32.gmra.mxu2 %v456_v63 }
  0x8a   :  { %797 = vmatpush.msrb.mxu2 %v537_v0  ;;  %812 = vmatpush.msrb.mxu3 %v554_v1 }
  0x8b   :  { %686 = vmatpush.msrb.mxu0 %v537_v0  ;;  %714 = vmatpush.msrb.mxu1 %v554_v1 }
  0x8c   :  { %613 = vmatmul.f32.gmra.mxu1 %v455_v2  ;;  %671 = vmatmul.f32.gmra.mxu3 %v457_v3 }
  0x8d   :  { %798 = vmatpush.msrb.mxu2 %v536_v4  ;;  %813 = vmatpush.msrb.mxu3 %v553_v5 }
  0x8e   :  { %687 = vmatpush.msrb.mxu0 %v536_v4  ;;  %715 = vmatpush.msrb.mxu1 %v553_v5 }
  0x8f   :  { %799 = vmatpush.msrb.mxu2 %v535_v6  ;;  %814 = vmatpush.msrb.mxu3 %v552_v7 }
  0x90   :  { %688 = vmatpush.msrb.mxu0 %v535_v6  ;;  %716 = vmatpush.msrb.mxu1 %v552_v7 }
  0x91   :  { %800 = vmatpush.msrb.mxu2 %v534_v8  ;;  %815 = vmatpush.msrb.mxu3 %v551_v9 }
  0x92   :  { %689 = vmatpush.msrb.mxu0 %v534_v8  ;;  %717 = vmatpush.msrb.mxu1 %v551_v9 }
  0x93   :  { %587 = vmatmul.f32.gmra.mxu0 %v460_v10  ;;  %645 = vmatmul.f32.gmra.mxu2 %v462_v11 }
  0x94   :  { %801 = vmatpush.msrb.mxu2 %v533_v12  ;;  %816 = vmatpush.msrb.mxu3 %v550_v13 }
  0x95   :  { %690 = vmatpush.msrb.mxu0 %v533_v12  ;;  %718 = vmatpush.msrb.mxu1 %v550_v13 }
  0x96   :  { %616 = vmatmul.f32.gmra.mxu1 %v461_v14  ;;  %674 = vmatmul.f32.gmra.mxu3 %v463_v15 }
  0x97   :  { %802 = vmatpush.msrb.mxu2 %v532_v16  ;;  %817 = vmatpush.msrb.mxu3 %v549_v17 }
  0x98   :  { %691 = vmatpush.msrb.mxu0 %v532_v16  ;;  %719 = vmatpush.msrb.mxu1 %v549_v17 }
  0x99   :  { %803 = vmatpush.msrb.mxu2 %v531_v18  ;;  %818 = vmatpush.msrb.mxu3 %v548_v19 }
  0x9a   :  { %692 = vmatpush.msrb.mxu0 %v531_v18  ;;  %720 = vmatpush.msrb.mxu1 %v548_v19 }
  0x9b   :  { %804 = vmatpush.msrb.mxu2 %v530_v20  ;;  %819 = vmatpush.msrb.mxu3 %v547_v21 }
  0x9c   :  { %693 = vmatpush.msrb.mxu0 %v530_v20  ;;  %721 = vmatpush.msrb.mxu1 %v547_v21 }
  0x9d   :  { %694 = vmatmul.f32.vlgmr.msrb.gmra.mxu0 %v446_v22  ;;  %700 = vmatmul.f32.vlgmr.msrb.gmra.mxu2 %v458_v23 }
  0x9e   :  { %820 = vmatpush.msrb.mxu3 %v546_v24  ;;  %722 = vmatpush.msrb.mxu1 %v546_v24 }
  0x9f   :  { %723 = vmatmul.f32.vlgmr.msrb.gmra.mxu1 %v447_v25  ;;  %729 = vmatmul.f32.vlgmr.msrb.gmra.mxu3 %v459_v26  ;;  %v227_v32 = vpop.f32.mrf.mxu0 }
  0xa0   :  { %761 = vperm.xlu1 %823, %v743_v27   ;;  %756 = vperm.xlu0 %822, %v742_v28  }
  0xa1   :  { %824 = vset.pattern.permute.xlu2 %v825_v35 }
  0xa2   :  { %746 = vperm.xlu2 %824, %v740_v29   ;;  %v256_v36 = vpop.f32.mrf.mxu1 }
  0xa5   :  { %697 = vmatmul.f32.gmra.mxu0 %v452_v30  ;;  %703 = vmatmul.f32.gmra.mxu2 %v464_v31  ;;  %v193_v35 = vpop.permute.xlu0 %192  ;;  %v285_v38 = vpop.f32.mrf.mxu2 }
  0xa6   :  { %v228_v37 = vadd.f32 %v227_v32, %v193_v35 }
  0xa7   :  { %726 = vmatmul.f32.gmra.mxu1 %v453_v33  ;;  %732 = vmatmul.f32.gmra.mxu3 %v465_v34 }
  0xa8   :  { %v257_v40 = vadd.f32 %v256_v36, %v228_v37  ;;  %v314_v41 = vpop.f32.mrf.mxu3 }
  0xa9   :  { %v230_v43 = vpop.f32.mrf.mxu0 }
  0xaa   :  { %v286_v42 = vadd.f32 %v285_v38, %v257_v40  ;;  %751 = vperm.xlu2 %824, %v741_v39  }
  0xac   :  { %v315_v44 = vadd.f32 %v314_v41, %v286_v42  ;;  %v259_v45 = vpop.f32.mrf.mxu1 }
  0xaf   :  { %v288_v48 = vpop.f32.mrf.mxu2 }
  0xb0   :  { %v198_v46 = vpop.permute.xlu0 %197 }
  0xb1   :  { %v231_v47 = vadd.f32 %v230_v43, %v198_v46 }
  0xb2   :  { %v317_v50 = vpop.f32.mrf.mxu3 }
  0xb3   :  { %v260_v49 = vadd.f32 %v259_v45, %v231_v47 }
  0xb4   :  { %v233_v52 = vpop.f32.mrf.mxu0 }
  0xb5   :  { %v289_v51 = vadd.f32 %v288_v48, %v260_v49 }
  0xb7   :  { %v318_v53 = vadd.f32 %v317_v50, %v289_v51  ;;  %v262_v54 = vpop.f32.mrf.mxu1 }
  0xba   :  { %v291_v57 = vpop.f32.mrf.mxu2 }
  0xbb   :  { %v203_v55 = vpop.permute.xlu1 %202 }
  0xbc   :  { %v234_v56 = vadd.f32 %v233_v52, %v203_v55 }
  0xbd   :  { %v320_v59 = vpop.f32.mrf.mxu3 }
  0xbe   :  { %v263_v58 = vadd.f32 %v262_v54, %v234_v56  ;;  %v236_v61 = vpop.f32.mrf.mxu0 }
  0xc0   :  { %v292_v60 = vadd.f32 %v291_v57, %v263_v58 }
  0xc2   :  { %v321_v62 = vadd.f32 %v320_v59, %v292_v60  ;;  %v265_v63 = vpop.f32.mrf.mxu1 }
  0xc5   :  { %v208_v0 = vpop.permute.xlu1 %207  ;;  %v294_v2 = vpop.f32.mrf.mxu2 }
  0xc6   :  { %v237_v1 = vadd.f32 %v236_v61, %v208_v0 }
  0xc7   :  { %v323_v4 = vpop.f32.mrf.mxu3 }
  0xc8   :  { %v266_v3 = vadd.f32 %v265_v63, %v237_v1  ;;  %v768_v1 = vld [vmem:[%s1776_s2] sm:$0xff] }
  0xc9   :  { %v343_v6 = vpop.f32.mrf.mxu0 }
  0xca   :  { %v295_v5 = vadd.f32 %v294_v2, %v266_v3  ;;  %v344_v37 = vadd.f32 %v343_v6, %v315_v44 }
  0xcc   :  { %v324_v7 = vadd.f32 %v323_v4, %v295_v5  ;;  %v372_v8 = vpop.f32.mrf.mxu1 }
  0xcd   :  { %v373_v41 = vadd.f32 %v372_v8, %v344_v37 }
  0xd0   :  { %v401_v9 = vpop.f32.mrf.mxu2 }
  0xd1   :  { %v402_v45 = vadd.f32 %v401_v9, %v373_v41 }
  0xd3   :  { %v430_v10 = vpop.f32.mrf.mxu3 }
  0xd4   :  { %v346_v11 = vpop.f32.mrf.mxu0  ;;  %v431_v56 = vadd.f32 %v430_v10, %v402_v45 }
  0xd5   :  { %v347_v49 = vadd.f32 %v346_v11, %v318_v53 }
  0xd7   :  { %v375_v12 = vpop.f32.mrf.mxu1 }
  0xd8   :  { %v376_v44 = vadd.f32 %v375_v12, %v347_v49 }
  0xda   :  { %v404_v13 = vpop.f32.mrf.mxu2 }
  0xdd   :  { %v1733_v14 = vpop.f32.mrf.mxu3 }
  0xde   :  { %v349_v15 = vpop.f32.mrf.mxu0 }
  0xdf   :  { %v350_v43 = vadd.f32 %v349_v15, %v321_v62  ;;  %v405_v62 = vadd.f32 %v404_v13, %v376_v44 }
  0xe1   :  { %v378_v16 = vpop.f32.mrf.mxu1 }
  0xe2   :  { %v379_v54 = vadd.f32 %v378_v16, %v350_v43  ;;  %v434_v16 = vadd.f32 %v1733_v14, %v405_v62 }
  0xe4   :  { %v407_v17 = vpop.f32.mrf.mxu2 }
  0xe5   :  { %v408_v59 = vadd.f32 %v407_v17, %v379_v54 }
  0xe7   :  { %v436_v18 = vpop.f32.mrf.mxu3 }
  0xe8   :  { %v352_v19 = vpop.f32.mrf.mxu0  ;;  %v437_v6 = vadd.f32 %v436_v18, %v408_v59 }
  0xe9   :  { %v353_v2 = vadd.f32 %v352_v19, %v324_v7  ;;  %v770_v7 = vld [vmem:[%s1776_s2 + $0x10] sm:$0xff] }
  0xeb   :  { %v381_v20 = vpop.f32.mrf.mxu1 }
  0xec   :  { %v382_v17 = vadd.f32 %v381_v20, %v353_v2  ;;  %v769_v20 = vld [vmem:[%s1776_s2 + $0x8] sm:$0xff] }
  0xee   :  { %v1735_v21 = vpop.f32.mrf.mxu2 }
  0xef   :  { %v411_v18 = vadd.f32 %v1735_v21, %v382_v17 }
  0xf1   :  { %v1737_v22 = vpop.f32.mrf.mxu3 }
  0xf2   :  { %v579_v23 = vpop.f32.mrf.mxu0  ;;  %v440_v21 = vadd.f32 %v1737_v22, %v411_v18 }
  0xf5   :  { %v608_v24 = vpop.f32.mrf.mxu1 }
  0xf6   :  { %v609_v36 = vadd.f32 %v608_v24, %v579_v23 }
  0xf8   :  { %v637_v25 = vpop.f32.mrf.mxu2 }
  0xf9   :  { %v638_v39 = vadd.f32 %v637_v25, %v609_v36 }
  0xfb   :  { %v666_v26 = vpop.f32.mrf.mxu3 }
  0xfc   :  { %v582_v27 = vpop.f32.mrf.mxu0  ;;  %v667_v46 = vadd.f32 %v666_v26, %v638_v39  ;;  %v747_v60 = vpop.permute.xlu2 %746 }
  0xff   :  { %v611_v28 = vpop.f32.mrf.mxu1 }
 0x100   :  { %v612_v47 = vadd.f32 %v611_v28, %v582_v27 }
 0x102   :  { %v640_v29 = vpop.f32.mrf.mxu2 }
 0x103   :  { %v641_v57 = vadd.f32 %v640_v29, %v612_v47 }
 0x104   :  { %v752_v28 = vpop.permute.xlu2 %751 }
 0x105   :  { %v669_v30 = vpop.f32.mrf.mxu3 }
 0x106   :  { %v585_v31 = vpop.f32.mrf.mxu0  ;;  %v670_v3 = vadd.f32 %v669_v30, %v641_v57 }
 0x109   :  { %v614_v32 = vpop.f32.mrf.mxu1 }
 0x10a   :  { %v615_v42 = vadd.f32 %v614_v32, %v585_v31 }
 0x10c   :  { %v643_v33 = vpop.f32.mrf.mxu2 }
 0x10d   :  { %v644_v51 = vadd.f32 %v643_v33, %v615_v42 }
 0x10f   :  { %v672_v34 = vpop.f32.mrf.mxu3 }
 0x110   :  { %v588_v35 = vpop.f32.mrf.mxu0  ;;  %v673_v61 = vadd.f32 %v672_v34, %v644_v51 }
 0x112   :  { %v757_v26 = vpop.permute.xlu0 %756  ;;  %v762_v39 = vpop.permute.xlu1 %761 }
 0x113   :  { %v617_v38 = vpop.f32.mrf.mxu1 }
 0x114   :  { %v618_v63 = vadd.f32 %v617_v38, %v588_v35 }
 0x116   :  { %v646_v40 = vpop.f32.mrf.mxu2 }
 0x117   :  { %v647_v10 = vadd.f32 %v646_v40, %v618_v63  ;;  %v771_v40 = vld [vmem:[%s1776_s2 + $0x18] sm:$0xff] }
 0x119   :  { %v675_v48 = vpop.f32.mrf.mxu3 }
 0x11a   :  { %v695_v50 = vpop.f32.mrf.mxu0  ;;  %v676_v19 = vadd.f32 %v675_v48, %v647_v10 }
 0x11b   :  { %v696_v52 = vadd.f32 %v695_v50, %v667_v46 }
 0x11c   :  { %v724_v55 = vpop.f32.mrf.mxu1 }
 0x11d   :  { %v725_v58 = vadd.f32 %v724_v55, %v696_v52 }
 0x11f   :  { %v736_v0 = vadd.f32 %v725_v58, %v431_v56 }
 0x120   :  { %v701_v53 = vpop.f32.mrf.mxu2 }
 0x121   :  { %v764_v4 = vadd.f32 %v747_v60, %v736_v0  ;;  %v702_v5 = vadd.f32 %v701_v53, %v673_v61 }
 0x122   :  { %v698_v8 = vpop.f32.mrf.mxu0  ;;  %v730_v9 = vpop.f32.mrf.mxu3 }
 0x123   :  { %v772_v11 = vadd.f32 %v768_v1, %v764_v4  ;;  %v699_v12 = vadd.f32 %v698_v8, %v670_v3  ;;  %v731_v15 = vadd.f32 %v730_v9, %v702_v5 }
 0x124   :  { %v727_v13 = vpop.f32.mrf.mxu1 }
 0x125   :  { %v776_v23 = vmul.f32 5.656854, %v772_v11  ;;  %v738_v24 = vadd.f32 %v731_v15, %v437_v6  ;;  %v728_v25 = vadd.f32 %v727_v13, %v699_v12 }
 0x127   :  { %781 = vst.msk [vmem:[%s1777_s7] sm:$0xff] %vm780_vm0, %v776_v23  ;;  %v766_v14 = vadd.f32 %v757_v26, %v738_v24  ;;  %v737_v27 = vadd.f32 %v728_v25, %v434_v16 }
 0x128   :  { %v704_v29 = vpop.f32.mrf.mxu2 }
 0x129   :  { %v774_v30 = vadd.f32 %v770_v7, %v766_v14  ;;  %v765_v31 = vadd.f32 %v752_v28, %v737_v27  ;;  %v705_v32 = vadd.f32 %v704_v29, %v676_v19 }
 0x12a   :  { %v733_v33 = vpop.f32.mrf.mxu3 }
 0x12b   :  { %v778_v34 = vmul.f32 5.656854, %v774_v30  ;;  %v773_v35 = vadd.f32 %v769_v20, %v765_v31  ;;  %v734_v36 = vadd.f32 %v733_v33, %v705_v32 }
 0x12d   :  { %783 = vst.msk [vmem:[%s1777_s7 + $0x10] sm:$0xff] %vm780_vm0, %v778_v34  ;;  %v777_v37 = vmul.f32 5.656854, %v773_v35  ;;  %v739_v38 = vadd.f32 %v734_v36, %v440_v21 }
 0x12f   :  { %782 = vst.msk [vmem:[%s1777_s7 + $0x8] sm:$0xff] %vm780_vm0, %v777_v37  ;;  %v767_v22 = vadd.f32 %v762_v39, %v739_v38 }
 0x131   :  { %v775_v41 = vadd.f32 %v771_v40, %v767_v22 }
 0x133   :  { %v779_v42 = vmul.f32 5.656854, %v775_v41 }
 0x135   :  { %784 = vst.msk [vmem:[%s1777_s7 + $0x18] sm:$0xff] %vm780_vm0, %v779_v42 }

</bundles_post_ra>
